<compile_context>
chip_gen: v7x
topology: tpu7x:2x2x1
jax: 0.10.0
libtpu: 0.0.40
codegen_flags: <defaults>
</compile_context>

<pallas_src>
import functools

import jax
import jax.numpy as jnp
from jax.experimental import pallas as pl
from jax.experimental.pallas import tpu as pltpu


def _round_up(x, m):
    return ((x + m - 1) // m) * m


def _pad2d(a, rows, cols):
    r, c = a.shape
    return jnp.pad(a, ((0, rows - r), (0, cols - c)))


def _ln_1pass(x, g, b, inv_n, eps=1e-5):
    """Single-pass LayerNorm over the last axis.

    `inv_n` is 1/true_dim; padded lanes of x are exact zeros and g/b are
    zero-padded, so the sums equal the un-padded sums and padded output lanes
    stay zero.
    """
    s1 = jnp.sum(x, axis=-1, keepdims=True)
    s2 = jnp.sum(x * x, axis=-1, keepdims=True)
    mu = s1 * inv_n
    var = jnp.maximum(s2 * inv_n - mu * mu, 0.0)
    return (x - mu) * jax.lax.rsqrt(var + eps) * g + b


def r_critic_kernel(
    # batch-tiled data
    obs_ref, h_ref, mask_ref,
    # resident params (constant index_map, single-buffered)
    ln0_ref,             # (2, Dp)      f32 : [ln0_gamma; ln0_beta]
    w1_ref,              # (Dp, Hp)     bf16
    w2_ref,              # (Hp, Hp)     bf16
    wih_ref,             # (Hp, 3*Hp)   bf16, gate order r | z | n (lane-aligned)
    whh_ref,             # (Hp, 3*Hp)   bf16
    vecs_ref,            # (16, Hp)     f32, packed LN/bias/value rows
    # outputs
    val_ref, hout_ref, feat_ref,
    *, inv_d, inv_h,
):
    f32 = jnp.float32
    bf16 = jnp.bfloat16
    Hp = hout_ref.shape[-1]

    vecs = vecs_ref[...]
    ln1g, ln1b = vecs[0:1], vecs[1:2]
    ln2g, ln2b = vecs[2:3], vecs[3:4]
    lnrg, lnrb = vecs[4:5], vecs[5:6]
    b1, b2 = vecs[6:7], vecs[7:8]
    b_r, b_z = vecs[8:9], vecs[9:10]          # pre-summed bih+bhh (r, z gates)
    b_in, b_hn = vecs[10:11], vecs[11:12]     # n-gate biases kept separate
    vw_row = vecs[12:13]                      # (1, Hp) value-head row
    vb = vecs[13:14, 0:1]                     # (1, 1)

    ln0 = ln0_ref[...]

    # ---- MLPBase: obs-LN -> fc1 + ReLU + LN -> fc2 + ReLU + LN ----
    x = _ln_1pass(obs_ref[...], ln0[0:1], ln0[1:2], inv_d)
    x = jnp.dot(x.astype(bf16), w1_ref[...], preferred_element_type=f32) + b1
    x = _ln_1pass(jnp.maximum(x, 0.0), ln1g, ln1b, inv_h)
    x = jnp.dot(x.astype(bf16), w2_ref[...], preferred_element_type=f32) + b2
    x = _ln_1pass(jnp.maximum(x, 0.0), ln2g, ln2b, inv_h)

    # ---- RNNLayer: mask hidden, one GRU step (two fused 3H-wide matmuls) ----
    h = h_ref[...] * mask_ref[...]                       # (TB,Hp) * (TB,1)
    gi = jnp.dot(x.astype(bf16), wih_ref[...], preferred_element_type=f32)
    gh = jnp.dot(h.astype(bf16), whh_ref[...], preferred_element_type=f32)
    # Hp % 128 == 0 -> gate slices are lane-exact.
    r = jax.nn.sigmoid(gi[:, 0:Hp] + gh[:, 0:Hp] + b_r)
    z = jax.nn.sigmoid(gi[:, Hp:2 * Hp] + gh[:, Hp:2 * Hp] + b_z)
    n = jnp.tanh(gi[:, 2 * Hp:3 * Hp] + b_in + r * (gh[:, 2 * Hp:3 * Hp] + b_hn))
    h_new = (1.0 - z) * n + z * h
    hout_ref[...] = h_new

    # post-GRU LayerNorm (RNNLayer.norm)
    feat = _ln_1pass(h_new, lnrg, lnrb, inv_h)
    feat_ref[...] = feat

    # ---- value head (num_v_out = 1): VPU multiply + lane reduce; write a
    #      lane-dense (TB,128) slab (value broadcast across lanes). ----
    val = jnp.sum(feat * vw_row, axis=-1, keepdims=True) + vb
    val_ref[...] = jnp.broadcast_to(val, val_ref.shape)


def init_params(key, obs_dim, hidden, num_v_out=1):
    """Deterministic synthetic parameter init (xavier-ish scaling)."""
    ks = jax.random.split(key, 18)
    f32 = jnp.float32

    def dense(k, fan_in, fan_out):
        return jax.random.normal(k, (fan_in, fan_out), f32) / jnp.sqrt(f32(fan_in))

    def small(k, n):
        return 0.1 * jax.random.normal(k, (1, n), f32)

    return {
        "ln0g": 1.0 + small(ks[0], obs_dim), "ln0b": small(ks[1], obs_dim),
        "w1": dense(ks[2], obs_dim, hidden), "b1": small(ks[3], hidden),
        "ln1g": 1.0 + small(ks[4], hidden), "ln1b": small(ks[5], hidden),
        "w2": dense(ks[6], hidden, hidden), "b2": small(ks[7], hidden),
        "ln2g": 1.0 + small(ks[8], hidden), "ln2b": small(ks[9], hidden),
        "wih": dense(ks[10], hidden, 3 * hidden),
        "whh": dense(ks[11], hidden, 3 * hidden),
        "bih": small(ks[12], 3 * hidden),
        "bhh": small(ks[13], 3 * hidden),
        "lnrg": 1.0 + small(ks[14], hidden), "lnrb": small(ks[15], hidden),
        "vw": dense(ks[16], hidden, num_v_out),
        "vb": jnp.zeros((1, num_v_out), f32),
    }


def _choose_tile(batch, block_b):
    """Batch tile: multiple of 16, and >=2 grid steps when the batch allows."""
    b16 = _round_up(max(batch, 16), 16)
    tb = _round_up(min(block_b, b16), 16)
    if b16 // tb < 2 and tb > 16:          # give v7x's 2nd TC / pipeline a step
        tb = _round_up(tb // 2, 16)
    bp = _round_up(b16, tb)
    return tb, bp


@functools.partial(jax.jit, static_argnames=("block_b", "single_buffer_weights"))
def _r_critic_forward_impl(share_obs, rnn_states, masks, params,
                           block_b, single_buffer_weights):
    f32 = jnp.float32
    bf16 = jnp.bfloat16
    B, D = share_obs.shape
    H = params["w1"].shape[1]
    V = params["vw"].shape[1]
    assert V == 1, "VPU value head implemented for num_v_out == 1"

    Dp = _round_up(D, 128)
    Hp = _round_up(H, 128)
    TB, Bp = _choose_tile(B, block_b)
    pad_b = Bp - B

    h_in = rnn_states.reshape(B, H)                     # recurrent_N = 1

    obs_p = jnp.pad(share_obs.astype(f32), ((0, pad_b), (0, Dp - D)))
    h_p = jnp.pad(h_in.astype(f32), ((0, pad_b), (0, Hp - H)))
    masks_p = jnp.pad(masks.astype(f32), ((0, pad_b), (0, 0)))

    # ---- lane-pad params (padded lanes are exact zeros) ----
    ln0 = jnp.concatenate([_pad2d(params["ln0g"].astype(f32), 1, Dp),
                           _pad2d(params["ln0b"].astype(f32), 1, Dp)], axis=0)

    w1 = _pad2d(params["w1"], Dp, Hp).astype(bf16)
    w2 = _pad2d(params["w2"], Hp, Hp).astype(bf16)

    def gate_block(w, g):
        return _pad2d(w[:, g * H:(g + 1) * H], Hp, Hp)

    wih = jnp.concatenate([gate_block(params["wih"], g) for g in range(3)],
                          axis=1).astype(bf16)          # (Hp, 3*Hp)
    whh = jnp.concatenate([gate_block(params["whh"], g) for g in range(3)],
                          axis=1).astype(bf16)          # (Hp, 3*Hp)

    def row(v):
        return _pad2d(v.astype(f32), 1, Hp)

    bih, bhh = params["bih"], params["bhh"]
    b_r = row(bih[:, 0:H] + bhh[:, 0:H])
    b_z = row(bih[:, H:2 * H] + bhh[:, H:2 * H])
    b_in = row(bih[:, 2 * H:3 * H])
    b_hn = row(bhh[:, 2 * H:3 * H])
    zrow = jnp.zeros((1, Hp), f32)

    vecs = jnp.concatenate([
        row(params["ln1g"]), row(params["ln1b"]),
        row(params["ln2g"]), row(params["ln2b"]),
        row(params["lnrg"]), row(params["lnrb"]),
        row(params["b1"]), row(params["b2"]),
        b_r, b_z, b_in, b_hn,
        row(params["vw"].T),
        jnp.broadcast_to(params["vb"].astype(f32), (1, Hp)),
        zrow, zrow,
    ], axis=0)                                           # (16, Hp)

    # ---- specs ----
    def resident_spec(shape):
        idx = lambda i, _n=len(shape): (0,) * _n
        if single_buffer_weights:
            # constant index_map -> one VMEM copy; skip default double-buffering
            return pl.BlockSpec(shape, idx, pipeline_mode=pl.Buffered(1))
        return pl.BlockSpec(shape, idx)

    grid = (Bp // TB,)
    in_specs = [
        pl.BlockSpec((TB, Dp), lambda i: (i, 0)),        # obs   (batch-tiled)
        pl.BlockSpec((TB, Hp), lambda i: (i, 0)),        # h     (batch-tiled)
        pl.BlockSpec((TB, 1), lambda i: (i, 0)),         # masks (batch-tiled)
        resident_spec((2, Dp)),                          # ln0
        resident_spec((Dp, Hp)),                         # w1
        resident_spec((Hp, Hp)),                         # w2
        resident_spec((Hp, 3 * Hp)),                     # wih (r|z|n)
        resident_spec((Hp, 3 * Hp)),                     # whh (r|z|n)
        resident_spec((16, Hp)),                         # packed vectors
    ]
    out_specs = (
        pl.BlockSpec((TB, 128), lambda i: (i, 0)),       # values (lane-dense)
        pl.BlockSpec((TB, Hp), lambda i: (i, 0)),        # new rnn state
        pl.BlockSpec((TB, Hp), lambda i: (i, 0)),        # state_feat
    )
    out_shapes = (
        jax.ShapeDtypeStruct((Bp, 128), f32),
        jax.ShapeDtypeStruct((Bp, Hp), f32),
        jax.ShapeDtypeStruct((Bp, Hp), f32),
    )

    # ---- explicit VMEM budget (v7x: 64 MiB physical) ----
    resident_bytes = (2 * Dp + 16 * Hp) * 4 \
        + (Dp * Hp + Hp * Hp + 2 * Hp * 3 * Hp) * 2
    if not single_buffer_weights:
        resident_bytes *= 2
    stream_bytes = 2 * TB * (Dp + Hp + 1) * 4            # inputs, double-buffered
    out_bytes = 2 * TB * (128 + 2 * Hp) * 4              # outputs, double-buffered
    vmem_limit = min(64 * 1024 * 1024,
                     max(32 * 1024 * 1024,
                         2 * (resident_bytes + stream_bytes + out_bytes)))

    kernel = functools.partial(r_critic_kernel, inv_d=1.0 / D, inv_h=1.0 / H)

    values, h_new, feat = pl.pallas_call(
        kernel,
        out_shape=out_shapes,
        grid_spec=pltpu.PrefetchScalarGridSpec(
            num_scalar_prefetch=0,
            grid=grid,
            in_specs=in_specs,
            out_specs=out_specs,
        ),
        compiler_params=pltpu.CompilerParams(
            dimension_semantics=("parallel",),           # megacore sharding on v7x
            vmem_limit_bytes=vmem_limit,
        ),
    )(obs_p, h_p, masks_p, ln0, w1, w2, wih, whh, vecs)

    values = values[:B, :1]
    h_new = h_new[:B, :H]
    feat = feat[:B, :H]
    return values, h_new.reshape(B, 1, H), feat


def r_critic_forward(share_obs, rnn_states, masks, params, block_b=256):
    """share_obs: (B, D)  rnn_states: (B, 1, H)  masks: (B, 1)."""
    try:
        out = _r_critic_forward_impl(share_obs, rnn_states, masks, params,
                                     block_b=block_b, single_buffer_weights=True)
        jax.block_until_ready(out)
        return out
    except Exception:
        # Fallback if this jax/libtpu build rejects pipeline_mode=pl.Buffered(1)
        # on BlockSpec: identical kernel, default double-buffered weights.
        return _r_critic_forward_impl(share_obs, rnn_states, masks, params,
                                      block_b=block_b, single_buffer_weights=False)


def _ref_forward(share_obs, rnn_states, masks, params):
    """Pure-JAX reference mirroring module math (bf16 matmul inputs, f32 acc)."""
    bf16 = jnp.bfloat16

    def ln(x, g, b, eps=1e-5):
        mu = x.mean(-1, keepdims=True)
        var = ((x - mu) ** 2).mean(-1, keepdims=True)
        return (x - mu) * jax.lax.rsqrt(var + eps) * g + b

    def mm(x, w):
        return jnp.dot(x.astype(bf16), w.astype(bf16),
                       preferred_element_type=jnp.float32)

    H = params["w1"].shape[1]
    x = ln(share_obs, params["ln0g"], params["ln0b"])
    x = ln(jnp.maximum(mm(x, params["w1"]) + params["b1"], 0.0),
           params["ln1g"], params["ln1b"])
    x = ln(jnp.maximum(mm(x, params["w2"]) + params["b2"], 0.0),
           params["ln2g"], params["ln2b"])
    h = rnn_states.reshape(-1, H) * masks
    gi = mm(x, params["wih"]) + params["bih"]
    gh = mm(h, params["whh"]) + params["bhh"]
    r = jax.nn.sigmoid(gi[:, :H] + gh[:, :H])
    z = jax.nn.sigmoid(gi[:, H:2 * H] + gh[:, H:2 * H])
    n = jnp.tanh(gi[:, 2 * H:] + r * gh[:, 2 * H:])
    h_new = (1 - z) * n + z * h
    feat = ln(h_new, params["lnrg"], params["lnrb"])
    values = feat @ params["vw"] + params["vb"]
    return values, h_new.reshape(rnn_states.shape), feat


if __name__ == "__main__":
    B, D, H, V = 8, 32, 64, 1      # batch, share_obs dim, critic_hidden_size, num_v_out

    key = jax.random.PRNGKey(0)
    k_obs, k_h, k_p = jax.random.split(key, 3)

    share_obs = jax.random.normal(k_obs, (B, D), jnp.float32)
    rnn_states = jax.random.normal(k_h, (B, 1, H), jnp.float32)   # recurrent_N = 1
    masks = jnp.ones((B, 1), jnp.float32).at[0, 0].set(0.0)       # one episode reset

    params = init_params(k_p, D, H, V)

    values, new_states, state_feat = r_critic_forward(share_obs, rnn_states, masks, params)
    jax.block_until_ready((values, new_states, state_feat))

    # correctness check against pure-JAX reference (same bf16-matmul recipe)
    rv, rh, rf = _ref_forward(share_obs, rnn_states, masks, params)
    assert jnp.allclose(values, rv, atol=1e-3, rtol=1e-3)
    assert jnp.allclose(new_states, rh, atol=1e-3, rtol=1e-3)
    assert jnp.allclose(state_feat, rf, atol=1e-3, rtol=1e-3)
    assert values.shape == (B, V) and new_states.shape == (B, 1, H) and state_feat.shape == (B, H)

    print("KERNEL_OK")
</pallas_src>

<mosaic_0001>
module attributes {stable_mosaic.version = 11 : i64} {
  func.func @r_critic_kernel(%arg0: i32, %arg1: memref<16x128xf32, #tpu.memory_space<vmem>>, %arg2: memref<16x128xf32, #tpu.memory_space<vmem>>, %arg3: memref<16x1xf32, #tpu.memory_space<vmem>>, %arg4: memref<2x128xf32, #tpu.memory_space<vmem>>, %arg5: memref<128x128xbf16, #tpu.memory_space<vmem>>, %arg6: memref<128x128xbf16, #tpu.memory_space<vmem>>, %arg7: memref<128x384xbf16, #tpu.memory_space<vmem>>, %arg8: memref<128x384xbf16, #tpu.memory_space<vmem>>, %arg9: memref<16x128xf32, #tpu.memory_space<vmem>>, %arg10: memref<16x128xf32, #tpu.memory_space<vmem>>, %arg11: memref<16x128xf32, #tpu.memory_space<vmem>>, %arg12: memref<16x128xf32, #tpu.memory_space<vmem>>) attributes {dimension_semantics = [#tpu.dimension_semantics<parallel>], iteration_bounds = array<i64: 1>, scalar_prefetch = 0 : i64, scratch_operands = 0 : i64, tpu.core_type = #tpu.core_type<tc>, window_params = [{transform_indices = @transform_0, window_bounds = array<i64: 16, 128>}, {transform_indices = @transform_1, window_bounds = array<i64: 16, 128>}, {transform_indices = @transform_2, window_bounds = array<i64: 16, 1>}, {pipeline_mode = #tpu.pipeline_mode<synchronous>, transform_indices = @transform_3, window_bounds = array<i64: 2, 128>}, {pipeline_mode = #tpu.pipeline_mode<synchronous>, transform_indices = @transform_4, window_bounds = array<i64: 128, 128>}, {pipeline_mode = #tpu.pipeline_mode<synchronous>, transform_indices = @transform_5, window_bounds = array<i64: 128, 128>}, {pipeline_mode = #tpu.pipeline_mode<synchronous>, transform_indices = @transform_6, window_bounds = array<i64: 128, 384>}, {pipeline_mode = #tpu.pipeline_mode<synchronous>, transform_indices = @transform_7, window_bounds = array<i64: 128, 384>}, {pipeline_mode = #tpu.pipeline_mode<synchronous>, transform_indices = @transform_8, window_bounds = array<i64: 16, 128>}, {transform_indices = @transform_9, window_bounds = array<i64: 16, 128>}, {transform_indices = @transform_10, window_bounds = array<i64: 16, 128>}, {transform_indices = @transform_11, window_bounds = array<i64: 16, 128>}]} {
    %c0 = arith.constant 0 : index
    %c0_0 = arith.constant 0 : index
    %0 = vector.load %arg9[%c0, %c0_0] : memref<16x128xf32, #tpu.memory_space<vmem>>, vector<16x128xf32>
    %1 = vector.extract_strided_slice %0 {offsets = [0, 0], sizes = [1, 128], strides = [1, 1]} : vector<16x128xf32> to vector<1x128xf32>
    %2 = vector.extract_strided_slice %0 {offsets = [1, 0], sizes = [1, 128], strides = [1, 1]} : vector<16x128xf32> to vector<1x128xf32>
    %3 = vector.extract_strided_slice %0 {offsets = [2, 0], sizes = [1, 128], strides = [1, 1]} : vector<16x128xf32> to vector<1x128xf32>
    %4 = vector.extract_strided_slice %0 {offsets = [3, 0], sizes = [1, 128], strides = [1, 1]} : vector<16x128xf32> to vector<1x128xf32>
    %5 = vector.extract_strided_slice %0 {offsets = [4, 0], sizes = [1, 128], strides = [1, 1]} : vector<16x128xf32> to vector<1x128xf32>
    %6 = vector.extract_strided_slice %0 {offsets = [5, 0], sizes = [1, 128], strides = [1, 1]} : vector<16x128xf32> to vector<1x128xf32>
    %7 = vector.extract_strided_slice %0 {offsets = [6, 0], sizes = [1, 128], strides = [1, 1]} : vector<16x128xf32> to vector<1x128xf32>
    %8 = vector.extract_strided_slice %0 {offsets = [7, 0], sizes = [1, 128], strides = [1, 1]} : vector<16x128xf32> to vector<1x128xf32>
    %9 = vector.extract_strided_slice %0 {offsets = [8, 0], sizes = [1, 128], strides = [1, 1]} : vector<16x128xf32> to vector<1x128xf32>
    %10 = vector.extract_strided_slice %0 {offsets = [9, 0], sizes = [1, 128], strides = [1, 1]} : vector<16x128xf32> to vector<1x128xf32>
    %11 = vector.extract_strided_slice %0 {offsets = [10, 0], sizes = [1, 128], strides = [1, 1]} : vector<16x128xf32> to vector<1x128xf32>
    %12 = vector.extract_strided_slice %0 {offsets = [11, 0], sizes = [1, 128], strides = [1, 1]} : vector<16x128xf32> to vector<1x128xf32>
    %13 = vector.extract_strided_slice %0 {offsets = [12, 0], sizes = [1, 128], strides = [1, 1]} : vector<16x128xf32> to vector<1x128xf32>
    %14 = vector.extract_strided_slice %0 {offsets = [13, 0], sizes = [1, 1], strides = [1, 1]} : vector<16x128xf32> to vector<1x1xf32>
    %c0_1 = arith.constant 0 : index
    %c0_2 = arith.constant 0 : index
    %15 = vector.load %arg4[%c0_1, %c0_2] : memref<2x128xf32, #tpu.memory_space<vmem>>, vector<2x128xf32>
    %c0_3 = arith.constant 0 : index
    %c0_4 = arith.constant 0 : index
    %16 = vector.load %arg1[%c0_3, %c0_4] : memref<16x128xf32, #tpu.memory_space<vmem>>, vector<16x128xf32>
    %17 = vector.extract_strided_slice %15 {offsets = [0, 0], sizes = [1, 128], strides = [1, 1]} : vector<2x128xf32> to vector<1x128xf32>
    %18 = vector.extract_strided_slice %15 {offsets = [1, 0], sizes = [1, 128], strides = [1, 1]} : vector<2x128xf32> to vector<1x128xf32>
    %cst = arith.constant dense<0.000000e+00> : vector<16xf32>
    %19 = vector.multi_reduction <add>, %16, %cst [1] : vector<16x128xf32> to vector<16xf32>
    %20 = vector.shape_cast %19 : vector<16xf32> to vector<16x1xf32>
    %21 = arith.mulf %16, %16 : vector<16x128xf32>
    %cst_5 = arith.constant dense<0.000000e+00> : vector<16xf32>
    %22 = vector.multi_reduction <add>, %21, %cst_5 [1] : vector<16x128xf32> to vector<16xf32>
    %23 = vector.shape_cast %22 : vector<16xf32> to vector<16x1xf32>
    %cst_6 = arith.constant 3.125000e-02 : f32
    %24 = vector.broadcast %cst_6 : f32 to vector<16x1xf32>
    %25 = arith.mulf %20, %24 : vector<16x1xf32>
    %cst_7 = arith.constant 3.125000e-02 : f32
    %26 = vector.broadcast %cst_7 : f32 to vector<16x1xf32>
    %27 = arith.mulf %23, %26 : vector<16x1xf32>
    %28 = arith.mulf %25, %25 : vector<16x1xf32>
    %29 = arith.subf %27, %28 : vector<16x1xf32>
    %cst_8 = arith.constant 0.000000e+00 : f32
    %30 = vector.broadcast %cst_8 : f32 to vector<16x1xf32>
    %31 = arith.maximumf %29, %30 : vector<16x1xf32>
    %32 = vector.broadcast %25 : vector<16x1xf32> to vector<16x128xf32>
    %33 = arith.subf %16, %32 : vector<16x128xf32>
    %cst_9 = arith.constant 9.99999974E-6 : f32
    %34 = vector.broadcast %cst_9 : f32 to vector<16x1xf32>
    %35 = arith.addf %31, %34 : vector<16x1xf32>
    %36 = math.rsqrt %35 : vector<16x1xf32>
    %37 = vector.broadcast %36 : vector<16x1xf32> to vector<16x128xf32>
    %38 = arith.mulf %33, %37 : vector<16x128xf32>
    %39 = vector.broadcast %17 : vector<1x128xf32> to vector<16x128xf32>
    %40 = arith.mulf %38, %39 : vector<16x128xf32>
    %41 = vector.broadcast %18 : vector<1x128xf32> to vector<16x128xf32>
    %42 = arith.addf %40, %41 : vector<16x128xf32>
    %43 = arith.truncf %42 : vector<16x128xf32> to vector<16x128xbf16>
    %c0_10 = arith.constant 0 : index
    %c0_11 = arith.constant 0 : index
    %44 = vector.load %arg5[%c0_10, %c0_11] : memref<128x128xbf16, #tpu.memory_space<vmem>>, vector<128x128xbf16>
    %cst_12 = arith.constant dense<0.000000e+00> : vector<16x128xf32>
    %45 = tpu.matmul %43, %44, %cst_12 {dimension_numbers = #tpu.dot_dimension_numbers<[1], [0], [0], [1], [0, 0, 1, 1], [], []>} : vector<16x128xbf16>, vector<128x128xbf16>, vector<16x128xf32> -> vector<16x128xf32>
    %46 = vector.broadcast %7 : vector<1x128xf32> to vector<16x128xf32>
    %47 = arith.addf %45, %46 : vector<16x128xf32>
    %cst_13 = arith.constant 0.000000e+00 : f32
    %48 = vector.broadcast %cst_13 : f32 to vector<16x128xf32>
    %49 = arith.maximumf %47, %48 : vector<16x128xf32>
    %cst_14 = arith.constant dense<0.000000e+00> : vector<16xf32>
    %50 = vector.multi_reduction <add>, %49, %cst_14 [1] : vector<16x128xf32> to vector<16xf32>
    %51 = vector.shape_cast %50 : vector<16xf32> to vector<16x1xf32>
    %52 = arith.mulf %49, %49 : vector<16x128xf32>
    %cst_15 = arith.constant dense<0.000000e+00> : vector<16xf32>
    %53 = vector.multi_reduction <add>, %52, %cst_15 [1] : vector<16x128xf32> to vector<16xf32>
    %54 = vector.shape_cast %53 : vector<16xf32> to vector<16x1xf32>
    %cst_16 = arith.constant 1.562500e-02 : f32
    %55 = vector.broadcast %cst_16 : f32 to vector<16x1xf32>
    %56 = arith.mulf %51, %55 : vector<16x1xf32>
    %cst_17 = arith.constant 1.562500e-02 : f32
    %57 = vector.broadcast %cst_17 : f32 to vector<16x1xf32>
    %58 = arith.mulf %54, %57 : vector<16x1xf32>
    %59 = arith.mulf %56, %56 : vector<16x1xf32>
    %60 = arith.subf %58, %59 : vector<16x1xf32>
    %cst_18 = arith.constant 0.000000e+00 : f32
    %61 = vector.broadcast %cst_18 : f32 to vector<16x1xf32>
    %62 = arith.maximumf %60, %61 : vector<16x1xf32>
    %63 = vector.broadcast %56 : vector<16x1xf32> to vector<16x128xf32>
    %64 = arith.subf %49, %63 : vector<16x128xf32>
    %cst_19 = arith.constant 9.99999974E-6 : f32
    %65 = vector.broadcast %cst_19 : f32 to vector<16x1xf32>
    %66 = arith.addf %62, %65 : vector<16x1xf32>
    %67 = math.rsqrt %66 : vector<16x1xf32>
    %68 = vector.broadcast %67 : vector<16x1xf32> to vector<16x128xf32>
    %69 = arith.mulf %64, %68 : vector<16x128xf32>
    %70 = vector.broadcast %1 : vector<1x128xf32> to vector<16x128xf32>
    %71 = arith.mulf %69, %70 : vector<16x128xf32>
    %72 = vector.broadcast %2 : vector<1x128xf32> to vector<16x128xf32>
    %73 = arith.addf %71, %72 : vector<16x128xf32>
    %74 = arith.truncf %73 : vector<16x128xf32> to vector<16x128xbf16>
    %c0_20 = arith.constant 0 : index
    %c0_21 = arith.constant 0 : index
    %75 = vector.load %arg6[%c0_20, %c0_21] : memref<128x128xbf16, #tpu.memory_space<vmem>>, vector<128x128xbf16>
    %cst_22 = arith.constant dense<0.000000e+00> : vector<16x128xf32>
    %76 = tpu.matmul %74, %75, %cst_22 {dimension_numbers = #tpu.dot_dimension_numbers<[1], [0], [0], [1], [0, 0, 1, 1], [], []>} : vector<16x128xbf16>, vector<128x128xbf16>, vector<16x128xf32> -> vector<16x128xf32>
    %77 = vector.broadcast %8 : vector<1x128xf32> to vector<16x128xf32>
    %78 = arith.addf %76, %77 : vector<16x128xf32>
    %cst_23 = arith.constant 0.000000e+00 : f32
    %79 = vector.broadcast %cst_23 : f32 to vector<16x128xf32>
    %80 = arith.maximumf %78, %79 : vector<16x128xf32>
    %cst_24 = arith.constant dense<0.000000e+00> : vector<16xf32>
    %81 = vector.multi_reduction <add>, %80, %cst_24 [1] : vector<16x128xf32> to vector<16xf32>
    %82 = vector.shape_cast %81 : vector<16xf32> to vector<16x1xf32>
    %83 = arith.mulf %80, %80 : vector<16x128xf32>
    %cst_25 = arith.constant dense<0.000000e+00> : vector<16xf32>
    %84 = vector.multi_reduction <add>, %83, %cst_25 [1] : vector<16x128xf32> to vector<16xf32>
    %85 = vector.shape_cast %84 : vector<16xf32> to vector<16x1xf32>
    %cst_26 = arith.constant 1.562500e-02 : f32
    %86 = vector.broadcast %cst_26 : f32 to vector<16x1xf32>
    %87 = arith.mulf %82, %86 : vector<16x1xf32>
    %cst_27 = arith.constant 1.562500e-02 : f32
    %88 = vector.broadcast %cst_27 : f32 to vector<16x1xf32>
    %89 = arith.mulf %85, %88 : vector<16x1xf32>
    %90 = arith.mulf %87, %87 : vector<16x1xf32>
    %91 = arith.subf %89, %90 : vector<16x1xf32>
    %cst_28 = arith.constant 0.000000e+00 : f32
    %92 = vector.broadcast %cst_28 : f32 to vector<16x1xf32>
    %93 = arith.maximumf %91, %92 : vector<16x1xf32>
    %94 = vector.broadcast %87 : vector<16x1xf32> to vector<16x128xf32>
    %95 = arith.subf %80, %94 : vector<16x128xf32>
    %cst_29 = arith.constant 9.99999974E-6 : f32
    %96 = vector.broadcast %cst_29 : f32 to vector<16x1xf32>
    %97 = arith.addf %93, %96 : vector<16x1xf32>
    %98 = math.rsqrt %97 : vector<16x1xf32>
    %99 = vector.broadcast %98 : vector<16x1xf32> to vector<16x128xf32>
    %100 = arith.mulf %95, %99 : vector<16x128xf32>
    %101 = vector.broadcast %3 : vector<1x128xf32> to vector<16x128xf32>
    %102 = arith.mulf %100, %101 : vector<16x128xf32>
    %103 = vector.broadcast %4 : vector<1x128xf32> to vector<16x128xf32>
    %104 = arith.addf %102, %103 : vector<16x128xf32>
    %c0_30 = arith.constant 0 : index
    %c0_31 = arith.constant 0 : index
    %105 = vector.load %arg2[%c0_30, %c0_31] : memref<16x128xf32, #tpu.memory_space<vmem>>, vector<16x128xf32>
    %c0_32 = arith.constant 0 : index
    %c0_33 = arith.constant 0 : index
    %106 = vector.load %arg3[%c0_32, %c0_33] : memref<16x1xf32, #tpu.memory_space<vmem>>, vector<16x1xf32>
    %107 = vector.broadcast %106 : vector<16x1xf32> to vector<16x128xf32>
    %108 = arith.mulf %105, %107 : vector<16x128xf32>
    %109 = arith.truncf %104 : vector<16x128xf32> to vector<16x128xbf16>
    %c0_34 = arith.constant 0 : index
    %c0_35 = arith.constant 0 : index
    %110 = vector.load %arg7[%c0_34, %c0_35] : memref<128x384xbf16, #tpu.memory_space<vmem>>, vector<128x384xbf16>
    %cst_36 = arith.constant dense<0.000000e+00> : vector<16x384xf32>
    %111 = tpu.matmul %109, %110, %cst_36 {dimension_numbers = #tpu.dot_dimension_numbers<[1], [0], [0], [1], [0, 0, 1, 1], [], []>} : vector<16x128xbf16>, vector<128x384xbf16>, vector<16x384xf32> -> vector<16x384xf32>
    %112 = arith.truncf %108 : vector<16x128xf32> to vector<16x128xbf16>
    %c0_37 = arith.constant 0 : index
    %c0_38 = arith.constant 0 : index
    %113 = vector.load %arg8[%c0_37, %c0_38] : memref<128x384xbf16, #tpu.memory_space<vmem>>, vector<128x384xbf16>
    %cst_39 = arith.constant dense<0.000000e+00> : vector<16x384xf32>
    %114 = tpu.matmul %112, %113, %cst_39 {dimension_numbers = #tpu.dot_dimension_numbers<[1], [0], [0], [1], [0, 0, 1, 1], [], []>} : vector<16x128xbf16>, vector<128x384xbf16>, vector<16x384xf32> -> vector<16x384xf32>
    %115 = vector.extract_strided_slice %111 {offsets = [0, 0], sizes = [16, 128], strides = [1, 1]} : vector<16x384xf32> to vector<16x128xf32>
    %116 = vector.extract_strided_slice %114 {offsets = [0, 0], sizes = [16, 128], strides = [1, 1]} : vector<16x384xf32> to vector<16x128xf32>
    %117 = arith.addf %115, %116 : vector<16x128xf32>
    %118 = vector.broadcast %9 : vector<1x128xf32> to vector<16x128xf32>
    %119 = arith.addf %117, %118 : vector<16x128xf32>
    %120 = arith.negf %119 : vector<16x128xf32>
    %121 = math.exp %120 : vector<16x128xf32>
    %cst_40 = arith.constant 1.000000e+00 : f32
    %122 = vector.broadcast %cst_40 : f32 to vector<16x128xf32>
    %123 = arith.addf %122, %121 : vector<16x128xf32>
    %124 = arith.divf %122, %123 : vector<16x128xf32>
    %125 = vector.extract_strided_slice %111 {offsets = [0, 128], sizes = [16, 128], strides = [1, 1]} : vector<16x384xf32> to vector<16x128xf32>
    %126 = vector.extract_strided_slice %114 {offsets = [0, 128], sizes = [16, 128], strides = [1, 1]} : vector<16x384xf32> to vector<16x128xf32>
    %127 = arith.addf %125, %126 : vector<16x128xf32>
    %128 = vector.broadcast %10 : vector<1x128xf32> to vector<16x128xf32>
    %129 = arith.addf %127, %128 : vector<16x128xf32>
    %130 = arith.negf %129 : vector<16x128xf32>
    %131 = math.exp %130 : vector<16x128xf32>
    %cst_41 = arith.constant 1.000000e+00 : f32
    %132 = vector.broadcast %cst_41 : f32 to vector<16x128xf32>
    %133 = arith.addf %132, %131 : vector<16x128xf32>
    %134 = arith.divf %132, %133 : vector<16x128xf32>
    %135 = vector.extract_strided_slice %111 {offsets = [0, 256], sizes = [16, 128], strides = [1, 1]} : vector<16x384xf32> to vector<16x128xf32>
    %136 = vector.broadcast %11 : vector<1x128xf32> to vector<16x128xf32>
    %137 = arith.addf %135, %136 : vector<16x128xf32>
    %138 = vector.extract_strided_slice %114 {offsets = [0, 256], sizes = [16, 128], strides = [1, 1]} : vector<16x384xf32> to vector<16x128xf32>
    %139 = vector.broadcast %12 : vector<1x128xf32> to vector<16x128xf32>
    %140 = arith.addf %138, %139 : vector<16x128xf32>
    %141 = arith.mulf %124, %140 : vector<16x128xf32>
    %142 = arith.addf %137, %141 : vector<16x128xf32>
    %143 = math.tanh %142 : vector<16x128xf32>
    %cst_42 = arith.constant 1.000000e+00 : f32
    %144 = vector.broadcast %cst_42 : f32 to vector<16x128xf32>
    %145 = arith.subf %144, %134 : vector<16x128xf32>
    %146 = arith.mulf %145, %143 : vector<16x128xf32>
    %147 = arith.mulf %134, %108 : vector<16x128xf32>
    %148 = arith.addf %146, %147 : vector<16x128xf32>
    %c0_43 = arith.constant 0 : index
    %c0_44 = arith.constant 0 : index
    %149 = vector.load %arg11[%c0_43, %c0_44] : memref<16x128xf32, #tpu.memory_space<vmem>>, vector<16x128xf32>
    tpu.vector_store %arg11[%c0_43, %c0_44], %148 {strides = array<i32>} : memref<16x128xf32, #tpu.memory_space<vmem>>, vector<16x128xf32>,
    %cst_45 = arith.constant dense<0.000000e+00> : vector<16xf32>
    %150 = vector.multi_reduction <add>, %148, %cst_45 [1] : vector<16x128xf32> to vector<16xf32>
    %151 = vector.shape_cast %150 : vector<16xf32> to vector<16x1xf32>
    %152 = arith.mulf %148, %148 : vector<16x128xf32>
    %cst_46 = arith.constant dense<0.000000e+00> : vector<16xf32>
    %153 = vector.multi_reduction <add>, %152, %cst_46 [1] : vector<16x128xf32> to vector<16xf32>
    %154 = vector.shape_cast %153 : vector<16xf32> to vector<16x1xf32>
    %cst_47 = arith.constant 1.562500e-02 : f32
    %155 = vector.broadcast %cst_47 : f32 to vector<16x1xf32>
    %156 = arith.mulf %151, %155 : vector<16x1xf32>
    %cst_48 = arith.constant 1.562500e-02 : f32
    %157 = vector.broadcast %cst_48 : f32 to vector<16x1xf32>
    %158 = arith.mulf %154, %157 : vector<16x1xf32>
    %159 = arith.mulf %156, %156 : vector<16x1xf32>
    %160 = arith.subf %158, %159 : vector<16x1xf32>
    %cst_49 = arith.constant 0.000000e+00 : f32
    %161 = vector.broadcast %cst_49 : f32 to vector<16x1xf32>
    %162 = arith.maximumf %160, %161 : vector<16x1xf32>
    %163 = vector.broadcast %156 : vector<16x1xf32> to vector<16x128xf32>
    %164 = arith.subf %148, %163 : vector<16x128xf32>
    %cst_50 = arith.constant 9.99999974E-6 : f32
    %165 = vector.broadcast %cst_50 : f32 to vector<16x1xf32>
    %166 = arith.addf %162, %165 : vector<16x1xf32>
    %167 = math.rsqrt %166 : vector<16x1xf32>
    %168 = vector.broadcast %167 : vector<16x1xf32> to vector<16x128xf32>
    %169 = arith.mulf %164, %168 : vector<16x128xf32>
    %170 = vector.broadcast %5 : vector<1x128xf32> to vector<16x128xf32>
    %171 = arith.mulf %169, %170 : vector<16x128xf32>
    %172 = vector.broadcast %6 : vector<1x128xf32> to vector<16x128xf32>
    %173 = arith.addf %171, %172 : vector<16x128xf32>
    %c0_51 = arith.constant 0 : index
    %c0_52 = arith.constant 0 : index
    %174 = vector.load %arg12[%c0_51, %c0_52] : memref<16x128xf32, #tpu.memory_space<vmem>>, vector<16x128xf32>
    tpu.vector_store %arg12[%c0_51, %c0_52], %173 {strides = array<i32>} : memref<16x128xf32, #tpu.memory_space<vmem>>, vector<16x128xf32>,
    %175 = vector.broadcast %13 : vector<1x128xf32> to vector<16x128xf32>
    %176 = arith.mulf %173, %175 : vector<16x128xf32>
    %cst_53 = arith.constant dense<0.000000e+00> : vector<16xf32>
    %177 = vector.multi_reduction <add>, %176, %cst_53 [1] : vector<16x128xf32> to vector<16xf32>
    %178 = vector.shape_cast %177 : vector<16xf32> to vector<16x1xf32>
    %179 = vector.broadcast %14 : vector<1x1xf32> to vector<16x1xf32>
    %180 = arith.addf %178, %179 : vector<16x1xf32>
    %181 = vector.shape_cast %180 : vector<16x1xf32> to vector<16x1xf32>
    %182 = vector.broadcast %181 : vector<16x1xf32> to vector<16x128xf32>
    %c0_54 = arith.constant 0 : index
    %c0_55 = arith.constant 0 : index
    %183 = vector.load %arg10[%c0_54, %c0_55] : memref<16x128xf32, #tpu.memory_space<vmem>>, vector<16x128xf32>
    tpu.vector_store %arg10[%c0_54, %c0_55], %182 {strides = array<i32>} : memref<16x128xf32, #tpu.memory_space<vmem>>, vector<16x128xf32>,
    return
  }
  func.func @transform_0(%arg0: i32) -> (i32, i32) {
    %c0_i32 = arith.constant 0 : i32
    %c0_i32_0 = arith.constant 0 : i32
    return %arg0, %c0_i32 : i32, i32
  }
  func.func @transform_1(%arg0: i32) -> (i32, i32) {
    %c0_i32 = arith.constant 0 : i32
    %c0_i32_0 = arith.constant 0 : i32
    return %arg0, %c0_i32 : i32, i32
  }
  func.func @transform_2(%arg0: i32) -> (i32, i32) {
    %c0_i32 = arith.constant 0 : i32
    %c0_i32_0 = arith.constant 0 : i32
    return %arg0, %c0_i32 : i32, i32
  }
  func.func @transform_3(%arg0: i32) -> (i32, i32) {
    %c0_i32 = arith.constant 0 : i32
    %c0_i32_0 = arith.constant 0 : i32
    %c0_i32_1 = arith.constant 0 : i32
    return %c0_i32, %c0_i32_0 : i32, i32
  }
  func.func @transform_4(%arg0: i32) -> (i32, i32) {
    %c0_i32 = arith.constant 0 : i32
    %c0_i32_0 = arith.constant 0 : i32
    %c0_i32_1 = arith.constant 0 : i32
    return %c0_i32, %c0_i32_0 : i32, i32
  }
  func.func @transform_5(%arg0: i32) -> (i32, i32) {
    %c0_i32 = arith.constant 0 : i32
    %c0_i32_0 = arith.constant 0 : i32
    %c0_i32_1 = arith.constant 0 : i32
    return %c0_i32, %c0_i32_0 : i32, i32
  }
  func.func @transform_6(%arg0: i32) -> (i32, i32) {
    %c0_i32 = arith.constant 0 : i32
    %c0_i32_0 = arith.constant 0 : i32
    %c0_i32_1 = arith.constant 0 : i32
    return %c0_i32, %c0_i32_0 : i32, i32
  }
  func.func @transform_7(%arg0: i32) -> (i32, i32) {
    %c0_i32 = arith.constant 0 : i32
    %c0_i32_0 = arith.constant 0 : i32
    %c0_i32_1 = arith.constant 0 : i32
    return %c0_i32, %c0_i32_0 : i32, i32
  }
  func.func @transform_8(%arg0: i32) -> (i32, i32) {
    %c0_i32 = arith.constant 0 : i32
    %c0_i32_0 = arith.constant 0 : i32
    %c0_i32_1 = arith.constant 0 : i32
    return %c0_i32, %c0_i32_0 : i32, i32
  }
  func.func @transform_9(%arg0: i32) -> (i32, i32) {
    %c0_i32 = arith.constant 0 : i32
    %c0_i32_0 = arith.constant 0 : i32
    return %arg0, %c0_i32 : i32, i32
  }
  func.func @transform_10(%arg0: i32) -> (i32, i32) {
    %c0_i32 = arith.constant 0 : i32
    %c0_i32_0 = arith.constant 0 : i32
    return %arg0, %c0_i32 : i32, i32
  }
  func.func @transform_11(%arg0: i32) -> (i32, i32) {
    %c0_i32 = arith.constant 0 : i32
    %c0_i32_0 = arith.constant 0 : i32
    return %arg0, %c0_i32 : i32, i32
  }
}

module attributes {stable_mosaic.version = 11 : i64} {
  func.func @r_critic_kernel(%arg0: i32, %arg1: memref<16x128xf32, #tpu.memory_space<vmem>>, %arg2: memref<16x128xf32, #tpu.memory_space<vmem>>, %arg3: memref<16x1xf32, #tpu.memory_space<vmem>>, %arg4: memref<2x128xf32, #tpu.memory_space<vmem>>, %arg5: memref<128x128xbf16, #tpu.memory_space<vmem>>, %arg6: memref<128x128xbf16, #tpu.memory_space<vmem>>, %arg7: memref<128x384xbf16, #tpu.memory_space<vmem>>, %arg8: memref<128x384xbf16, #tpu.memory_space<vmem>>, %arg9: memref<16x128xf32, #tpu.memory_space<vmem>>, %arg10: memref<16x128xf32, #tpu.memory_space<vmem>>, %arg11: memref<16x128xf32, #tpu.memory_space<vmem>>, %arg12: memref<16x128xf32, #tpu.memory_space<vmem>>) attributes {dimension_semantics = [#tpu.dimension_semantics<parallel>], iteration_bounds = array<i64: 1>, scalar_prefetch = 0 : i64, scratch_operands = 0 : i64, tpu.core_type = #tpu.core_type<tc>, window_params = [{transform_indices = @transform_0, window_bounds = array<i64: 16, 128>}, {transform_indices = @transform_1, window_bounds = array<i64: 16, 128>}, {transform_indices = @transform_2, window_bounds = array<i64: 16, 1>}, {pipeline_mode = #tpu.pipeline_mode<synchronous>, transform_indices = @transform_3, window_bounds = array<i64: 2, 128>}, {pipeline_mode = #tpu.pipeline_mode<synchronous>, transform_indices = @transform_4, window_bounds = array<i64: 128, 128>}, {pipeline_mode = #tpu.pipeline_mode<synchronous>, transform_indices = @transform_5, window_bounds = array<i64: 128, 128>}, {pipeline_mode = #tpu.pipeline_mode<synchronous>, transform_indices = @transform_6, window_bounds = array<i64: 128, 384>}, {pipeline_mode = #tpu.pipeline_mode<synchronous>, transform_indices = @transform_7, window_bounds = array<i64: 128, 384>}, {pipeline_mode = #tpu.pipeline_mode<synchronous>, transform_indices = @transform_8, window_bounds = array<i64: 16, 128>}, {transform_indices = @transform_9, window_bounds = array<i64: 16, 128>}, {transform_indices = @transform_10, window_bounds = array<i64: 16, 128>}, {transform_indices = @transform_11, window_bounds = array<i64: 16, 128>}]} {
    %c0 = arith.constant 0 : index
    %c0_0 = arith.constant 0 : index
    %0 = vector.load %arg9[%c0, %c0_0] : memref<16x128xf32, #tpu.memory_space<vmem>>, vector<16x128xf32>
    %1 = vector.extract_strided_slice %0 {offsets = [0, 0], sizes = [1, 128], strides = [1, 1]} : vector<16x128xf32> to vector<1x128xf32>
    %2 = vector.extract_strided_slice %0 {offsets = [1, 0], sizes = [1, 128], strides = [1, 1]} : vector<16x128xf32> to vector<1x128xf32>
    %3 = vector.extract_strided_slice %0 {offsets = [2, 0], sizes = [1, 128], strides = [1, 1]} : vector<16x128xf32> to vector<1x128xf32>
    %4 = vector.extract_strided_slice %0 {offsets = [3, 0], sizes = [1, 128], strides = [1, 1]} : vector<16x128xf32> to vector<1x128xf32>
    %5 = vector.extract_strided_slice %0 {offsets = [4, 0], sizes = [1, 128], strides = [1, 1]} : vector<16x128xf32> to vector<1x128xf32>
    %6 = vector.extract_strided_slice %0 {offsets = [5, 0], sizes = [1, 128], strides = [1, 1]} : vector<16x128xf32> to vector<1x128xf32>
    %7 = vector.extract_strided_slice %0 {offsets = [6, 0], sizes = [1, 128], strides = [1, 1]} : vector<16x128xf32> to vector<1x128xf32>
    %8 = vector.extract_strided_slice %0 {offsets = [7, 0], sizes = [1, 128], strides = [1, 1]} : vector<16x128xf32> to vector<1x128xf32>
    %9 = vector.extract_strided_slice %0 {offsets = [8, 0], sizes = [1, 128], strides = [1, 1]} : vector<16x128xf32> to vector<1x128xf32>
    %10 = vector.extract_strided_slice %0 {offsets = [9, 0], sizes = [1, 128], strides = [1, 1]} : vector<16x128xf32> to vector<1x128xf32>
    %11 = vector.extract_strided_slice %0 {offsets = [10, 0], sizes = [1, 128], strides = [1, 1]} : vector<16x128xf32> to vector<1x128xf32>
    %12 = vector.extract_strided_slice %0 {offsets = [11, 0], sizes = [1, 128], strides = [1, 1]} : vector<16x128xf32> to vector<1x128xf32>
    %13 = vector.extract_strided_slice %0 {offsets = [12, 0], sizes = [1, 128], strides = [1, 1]} : vector<16x128xf32> to vector<1x128xf32>
    %14 = vector.extract_strided_slice %0 {offsets = [13, 0], sizes = [1, 1], strides = [1, 1]} : vector<16x128xf32> to vector<1x1xf32>
    %c0_1 = arith.constant 0 : index
    %c0_2 = arith.constant 0 : index
    %15 = vector.load %arg4[%c0_1, %c0_2] : memref<2x128xf32, #tpu.memory_space<vmem>>, vector<2x128xf32>
    %c0_3 = arith.constant 0 : index
    %c0_4 = arith.constant 0 : index
    %16 = vector.load %arg1[%c0_3, %c0_4] : memref<16x128xf32, #tpu.memory_space<vmem>>, vector<16x128xf32>
    %17 = vector.extract_strided_slice %15 {offsets = [0, 0], sizes = [1, 128], strides = [1, 1]} : vector<2x128xf32> to vector<1x128xf32>
    %18 = vector.extract_strided_slice %15 {offsets = [1, 0], sizes = [1, 128], strides = [1, 1]} : vector<2x128xf32> to vector<1x128xf32>
    %cst = arith.constant dense<0.000000e+00> : vector<16xf32>
    %19 = vector.multi_reduction <add>, %16, %cst [1] : vector<16x128xf32> to vector<16xf32>
    %20 = vector.shape_cast %19 : vector<16xf32> to vector<16x1xf32>
    %21 = arith.mulf %16, %16 : vector<16x128xf32>
    %cst_5 = arith.constant dense<0.000000e+00> : vector<16xf32>
    %22 = vector.multi_reduction <add>, %21, %cst_5 [1] : vector<16x128xf32> to vector<16xf32>
    %23 = vector.shape_cast %22 : vector<16xf32> to vector<16x1xf32>
    %cst_6 = arith.constant 3.125000e-02 : f32
    %24 = vector.broadcast %cst_6 : f32 to vector<16x1xf32>
    %25 = arith.mulf %20, %24 : vector<16x1xf32>
    %cst_7 = arith.constant 3.125000e-02 : f32
    %26 = vector.broadcast %cst_7 : f32 to vector<16x1xf32>
    %27 = arith.mulf %23, %26 : vector<16x1xf32>
    %28 = arith.mulf %25, %25 : vector<16x1xf32>
    %29 = arith.subf %27, %28 : vector<16x1xf32>
    %cst_8 = arith.constant 0.000000e+00 : f32
    %30 = vector.broadcast %cst_8 : f32 to vector<16x1xf32>
    %31 = arith.maximumf %29, %30 : vector<16x1xf32>
    %32 = vector.broadcast %25 : vector<16x1xf32> to vector<16x128xf32>
    %33 = arith.subf %16, %32 : vector<16x128xf32>
    %cst_9 = arith.constant 9.99999974E-6 : f32
    %34 = vector.broadcast %cst_9 : f32 to vector<16x1xf32>
    %35 = arith.addf %31, %34 : vector<16x1xf32>
    %36 = math.rsqrt %35 : vector<16x1xf32>
    %37 = vector.broadcast %36 : vector<16x1xf32> to vector<16x128xf32>
    %38 = arith.mulf %33, %37 : vector<16x128xf32>
    %39 = vector.broadcast %17 : vector<1x128xf32> to vector<16x128xf32>
    %40 = arith.mulf %38, %39 : vector<16x128xf32>
    %41 = vector.broadcast %18 : vector<1x128xf32> to vector<16x128xf32>
    %42 = arith.addf %40, %41 : vector<16x128xf32>
    %43 = arith.truncf %42 : vector<16x128xf32> to vector<16x128xbf16>
    %c0_10 = arith.constant 0 : index
    %c0_11 = arith.constant 0 : index
    %44 = vector.load %arg5[%c0_10, %c0_11] : memref<128x128xbf16, #tpu.memory_space<vmem>>, vector<128x128xbf16>
    %cst_12 = arith.constant dense<0.000000e+00> : vector<16x128xf32>
    %45 = tpu.matmul %43, %44, %cst_12 {dimension_numbers = #tpu.dot_dimension_numbers<[1], [0], [0], [1], [0, 0, 1, 1], [], []>} : vector<16x128xbf16>, vector<128x128xbf16>, vector<16x128xf32> -> vector<16x128xf32>
    %46 = vector.broadcast %7 : vector<1x128xf32> to vector<16x128xf32>
    %47 = arith.addf %45, %46 : vector<16x128xf32>
    %cst_13 = arith.constant 0.000000e+00 : f32
    %48 = vector.broadcast %cst_13 : f32 to vector<16x128xf32>
    %49 = arith.maximumf %47, %48 : vector<16x128xf32>
    %cst_14 = arith.constant dense<0.000000e+00> : vector<16xf32>
    %50 = vector.multi_reduction <add>, %49, %cst_14 [1] : vector<16x128xf32> to vector<16xf32>
    %51 = vector.shape_cast %50 : vector<16xf32> to vector<16x1xf32>
    %52 = arith.mulf %49, %49 : vector<16x128xf32>
    %cst_15 = arith.constant dense<0.000000e+00> : vector<16xf32>
    %53 = vector.multi_reduction <add>, %52, %cst_15 [1] : vector<16x128xf32> to vector<16xf32>
    %54 = vector.shape_cast %53 : vector<16xf32> to vector<16x1xf32>
    %cst_16 = arith.constant 1.562500e-02 : f32
    %55 = vector.broadcast %cst_16 : f32 to vector<16x1xf32>
    %56 = arith.mulf %51, %55 : vector<16x1xf32>
    %cst_17 = arith.constant 1.562500e-02 : f32
    %57 = vector.broadcast %cst_17 : f32 to vector<16x1xf32>
    %58 = arith.mulf %54, %57 : vector<16x1xf32>
    %59 = arith.mulf %56, %56 : vector<16x1xf32>
    %60 = arith.subf %58, %59 : vector<16x1xf32>
    %cst_18 = arith.constant 0.000000e+00 : f32
    %61 = vector.broadcast %cst_18 : f32 to vector<16x1xf32>
    %62 = arith.maximumf %60, %61 : vector<16x1xf32>
    %63 = vector.broadcast %56 : vector<16x1xf32> to vector<16x128xf32>
    %64 = arith.subf %49, %63 : vector<16x128xf32>
    %cst_19 = arith.constant 9.99999974E-6 : f32
    %65 = vector.broadcast %cst_19 : f32 to vector<16x1xf32>
    %66 = arith.addf %62, %65 : vector<16x1xf32>
    %67 = math.rsqrt %66 : vector<16x1xf32>
    %68 = vector.broadcast %67 : vector<16x1xf32> to vector<16x128xf32>
    %69 = arith.mulf %64, %68 : vector<16x128xf32>
    %70 = vector.broadcast %1 : vector<1x128xf32> to vector<16x128xf32>
    %71 = arith.mulf %69, %70 : vector<16x128xf32>
    %72 = vector.broadcast %2 : vector<1x128xf32> to vector<16x128xf32>
    %73 = arith.addf %71, %72 : vector<16x128xf32>
    %74 = arith.truncf %73 : vector<16x128xf32> to vector<16x128xbf16>
    %c0_20 = arith.constant 0 : index
    %c0_21 = arith.constant 0 : index
    %75 = vector.load %arg6[%c0_20, %c0_21] : memref<128x128xbf16, #tpu.memory_space<vmem>>, vector<128x128xbf16>
    %cst_22 = arith.constant dense<0.000000e+00> : vector<16x128xf32>
    %76 = tpu.matmul %74, %75, %cst_22 {dimension_numbers = #tpu.dot_dimension_numbers<[1], [0], [0], [1], [0, 0, 1, 1], [], []>} : vector<16x128xbf16>, vector<128x128xbf16>, vector<16x128xf32> -> vector<16x128xf32>
    %77 = vector.broadcast %8 : vector<1x128xf32> to vector<16x128xf32>
    %78 = arith.addf %76, %77 : vector<16x128xf32>
    %cst_23 = arith.constant 0.000000e+00 : f32
    %79 = vector.broadcast %cst_23 : f32 to vector<16x128xf32>
    %80 = arith.maximumf %78, %79 : vector<16x128xf32>
    %cst_24 = arith.constant dense<0.000000e+00> : vector<16xf32>
    %81 = vector.multi_reduction <add>, %80, %cst_24 [1] : vector<16x128xf32> to vector<16xf32>
    %82 = vector.shape_cast %81 : vector<16xf32> to vector<16x1xf32>
    %83 = arith.mulf %80, %80 : vector<16x128xf32>
    %cst_25 = arith.constant dense<0.000000e+00> : vector<16xf32>
    %84 = vector.multi_reduction <add>, %83, %cst_25 [1] : vector<16x128xf32> to vector<16xf32>
    %85 = vector.shape_cast %84 : vector<16xf32> to vector<16x1xf32>
    %cst_26 = arith.constant 1.562500e-02 : f32
    %86 = vector.broadcast %cst_26 : f32 to vector<16x1xf32>
    %87 = arith.mulf %82, %86 : vector<16x1xf32>
    %cst_27 = arith.constant 1.562500e-02 : f32
    %88 = vector.broadcast %cst_27 : f32 to vector<16x1xf32>
    %89 = arith.mulf %85, %88 : vector<16x1xf32>
    %90 = arith.mulf %87, %87 : vector<16x1xf32>
    %91 = arith.subf %89, %90 : vector<16x1xf32>
    %cst_28 = arith.constant 0.000000e+00 : f32
    %92 = vector.broadcast %cst_28 : f32 to vector<16x1xf32>
    %93 = arith.maximumf %91, %92 : vector<16x1xf32>
    %94 = vector.broadcast %87 : vector<16x1xf32> to vector<16x128xf32>
    %95 = arith.subf %80, %94 : vector<16x128xf32>
    %cst_29 = arith.constant 9.99999974E-6 : f32
    %96 = vector.broadcast %cst_29 : f32 to vector<16x1xf32>
    %97 = arith.addf %93, %96 : vector<16x1xf32>
    %98 = math.rsqrt %97 : vector<16x1xf32>
    %99 = vector.broadcast %98 : vector<16x1xf32> to vector<16x128xf32>
    %100 = arith.mulf %95, %99 : vector<16x128xf32>
    %101 = vector.broadcast %3 : vector<1x128xf32> to vector<16x128xf32>
    %102 = arith.mulf %100, %101 : vector<16x128xf32>
    %103 = vector.broadcast %4 : vector<1x128xf32> to vector<16x128xf32>
    %104 = arith.addf %102, %103 : vector<16x128xf32>
    %c0_30 = arith.constant 0 : index
    %c0_31 = arith.constant 0 : index
    %105 = vector.load %arg2[%c0_30, %c0_31] : memref<16x128xf32, #tpu.memory_space<vmem>>, vector<16x128xf32>
    %c0_32 = arith.constant 0 : index
    %c0_33 = arith.constant 0 : index
    %106 = vector.load %arg3[%c0_32, %c0_33] : memref<16x1xf32, #tpu.memory_space<vmem>>, vector<16x1xf32>
    %107 = vector.broadcast %106 : vector<16x1xf32> to vector<16x128xf32>
    %108 = arith.mulf %105, %107 : vector<16x128xf32>
    %109 = arith.truncf %104 : vector<16x128xf32> to vector<16x128xbf16>
    %c0_34 = arith.constant 0 : index
    %c0_35 = arith.constant 0 : index
    %110 = vector.load %arg7[%c0_34, %c0_35] : memref<128x384xbf16, #tpu.memory_space<vmem>>, vector<128x384xbf16>
    %cst_36 = arith.constant dense<0.000000e+00> : vector<16x384xf32>
    %111 = tpu.matmul %109, %110, %cst_36 {dimension_numbers = #tpu.dot_dimension_numbers<[1], [0], [0], [1], [0, 0, 1, 1], [], []>} : vector<16x128xbf16>, vector<128x384xbf16>, vector<16x384xf32> -> vector<16x384xf32>
    %112 = arith.truncf %108 : vector<16x128xf32> to vector<16x128xbf16>
    %c0_37 = arith.constant 0 : index
    %c0_38 = arith.constant 0 : index
    %113 = vector.load %arg8[%c0_37, %c0_38] : memref<128x384xbf16, #tpu.memory_space<vmem>>, vector<128x384xbf16>
    %cst_39 = arith.constant dense<0.000000e+00> : vector<16x384xf32>
    %114 = tpu.matmul %112, %113, %cst_39 {dimension_numbers = #tpu.dot_dimension_numbers<[1], [0], [0], [1], [0, 0, 1, 1], [], []>} : vector<16x128xbf16>, vector<128x384xbf16>, vector<16x384xf32> -> vector<16x384xf32>
    %115 = vector.extract_strided_slice %111 {offsets = [0, 0], sizes = [16, 128], strides = [1, 1]} : vector<16x384xf32> to vector<16x128xf32>
    %116 = vector.extract_strided_slice %114 {offsets = [0, 0], sizes = [16, 128], strides = [1, 1]} : vector<16x384xf32> to vector<16x128xf32>
    %117 = arith.addf %115, %116 : vector<16x128xf32>
    %118 = vector.broadcast %9 : vector<1x128xf32> to vector<16x128xf32>
    %119 = arith.addf %117, %118 : vector<16x128xf32>
    %120 = arith.negf %119 : vector<16x128xf32>
    %121 = math.exp %120 : vector<16x128xf32>
    %cst_40 = arith.constant 1.000000e+00 : f32
    %122 = vector.broadcast %cst_40 : f32 to vector<16x128xf32>
    %123 = arith.addf %122, %121 : vector<16x128xf32>
    %124 = arith.divf %122, %123 : vector<16x128xf32>
    %125 = vector.extract_strided_slice %111 {offsets = [0, 128], sizes = [16, 128], strides = [1, 1]} : vector<16x384xf32> to vector<16x128xf32>
    %126 = vector.extract_strided_slice %114 {offsets = [0, 128], sizes = [16, 128], strides = [1, 1]} : vector<16x384xf32> to vector<16x128xf32>
    %127 = arith.addf %125, %126 : vector<16x128xf32>
    %128 = vector.broadcast %10 : vector<1x128xf32> to vector<16x128xf32>
    %129 = arith.addf %127, %128 : vector<16x128xf32>
    %130 = arith.negf %129 : vector<16x128xf32>
    %131 = math.exp %130 : vector<16x128xf32>
    %cst_41 = arith.constant 1.000000e+00 : f32
    %132 = vector.broadcast %cst_41 : f32 to vector<16x128xf32>
    %133 = arith.addf %132, %131 : vector<16x128xf32>
    %134 = arith.divf %132, %133 : vector<16x128xf32>
    %135 = vector.extract_strided_slice %111 {offsets = [0, 256], sizes = [16, 128], strides = [1, 1]} : vector<16x384xf32> to vector<16x128xf32>
    %136 = vector.broadcast %11 : vector<1x128xf32> to vector<16x128xf32>
    %137 = arith.addf %135, %136 : vector<16x128xf32>
    %138 = vector.extract_strided_slice %114 {offsets = [0, 256], sizes = [16, 128], strides = [1, 1]} : vector<16x384xf32> to vector<16x128xf32>
    %139 = vector.broadcast %12 : vector<1x128xf32> to vector<16x128xf32>
    %140 = arith.addf %138, %139 : vector<16x128xf32>
    %141 = arith.mulf %124, %140 : vector<16x128xf32>
    %142 = arith.addf %137, %141 : vector<16x128xf32>
    %143 = math.tanh %142 : vector<16x128xf32>
    %cst_42 = arith.constant 1.000000e+00 : f32
    %144 = vector.broadcast %cst_42 : f32 to vector<16x128xf32>
    %145 = arith.subf %144, %134 : vector<16x128xf32>
    %146 = arith.mulf %145, %143 : vector<16x128xf32>
    %147 = arith.mulf %134, %108 : vector<16x128xf32>
    %148 = arith.addf %146, %147 : vector<16x128xf32>
    %c0_43 = arith.constant 0 : index
    %c0_44 = arith.constant 0 : index
    %149 = vector.load %arg11[%c0_43, %c0_44] : memref<16x128xf32, #tpu.memory_space<vmem>>, vector<16x128xf32>
    tpu.vector_store %arg11[%c0_43, %c0_44], %148 {strides = array<i32>} : memref<16x128xf32, #tpu.memory_space<vmem>>, vector<16x128xf32>,
    %cst_45 = arith.constant dense<0.000000e+00> : vector<16xf32>
    %150 = vector.multi_reduction <add>, %148, %cst_45 [1] : vector<16x128xf32> to vector<16xf32>
    %151 = vector.shape_cast %150 : vector<16xf32> to vector<16x1xf32>
    %152 = arith.mulf %148, %148 : vector<16x128xf32>
    %cst_46 = arith.constant dense<0.000000e+00> : vector<16xf32>
    %153 = vector.multi_reduction <add>, %152, %cst_46 [1] : vector<16x128xf32> to vector<16xf32>
    %154 = vector.shape_cast %153 : vector<16xf32> to vector<16x1xf32>
    %cst_47 = arith.constant 1.562500e-02 : f32
    %155 = vector.broadcast %cst_47 : f32 to vector<16x1xf32>
    %156 = arith.mulf %151, %155 : vector<16x1xf32>
    %cst_48 = arith.constant 1.562500e-02 : f32
    %157 = vector.broadcast %cst_48 : f32 to vector<16x1xf32>
    %158 = arith.mulf %154, %157 : vector<16x1xf32>
    %159 = arith.mulf %156, %156 : vector<16x1xf32>
    %160 = arith.subf %158, %159 : vector<16x1xf32>
    %cst_49 = arith.constant 0.000000e+00 : f32
    %161 = vector.broadcast %cst_49 : f32 to vector<16x1xf32>
    %162 = arith.maximumf %160, %161 : vector<16x1xf32>
    %163 = vector.broadcast %156 : vector<16x1xf32> to vector<16x128xf32>
    %164 = arith.subf %148, %163 : vector<16x128xf32>
    %cst_50 = arith.constant 9.99999974E-6 : f32
    %165 = vector.broadcast %cst_50 : f32 to vector<16x1xf32>
    %166 = arith.addf %162, %165 : vector<16x1xf32>
    %167 = math.rsqrt %166 : vector<16x1xf32>
    %168 = vector.broadcast %167 : vector<16x1xf32> to vector<16x128xf32>
    %169 = arith.mulf %164, %168 : vector<16x128xf32>
    %170 = vector.broadcast %5 : vector<1x128xf32> to vector<16x128xf32>
    %171 = arith.mulf %169, %170 : vector<16x128xf32>
    %172 = vector.broadcast %6 : vector<1x128xf32> to vector<16x128xf32>
    %173 = arith.addf %171, %172 : vector<16x128xf32>
    %c0_51 = arith.constant 0 : index
    %c0_52 = arith.constant 0 : index
    %174 = vector.load %arg12[%c0_51, %c0_52] : memref<16x128xf32, #tpu.memory_space<vmem>>, vector<16x128xf32>
    tpu.vector_store %arg12[%c0_51, %c0_52], %173 {strides = array<i32>} : memref<16x128xf32, #tpu.memory_space<vmem>>, vector<16x128xf32>,
    %175 = vector.broadcast %13 : vector<1x128xf32> to vector<16x128xf32>
    %176 = arith.mulf %173, %175 : vector<16x128xf32>
    %cst_53 = arith.constant dense<0.000000e+00> : vector<16xf32>
    %177 = vector.multi_reduction <add>, %176, %cst_53 [1] : vector<16x128xf32> to vector<16xf32>
    %178 = vector.shape_cast %177 : vector<16xf32> to vector<16x1xf32>
    %179 = vector.broadcast %14 : vector<1x1xf32> to vector<16x1xf32>
    %180 = arith.addf %178, %179 : vector<16x1xf32>
    %181 = vector.shape_cast %180 : vector<16x1xf32> to vector<16x1xf32>
    %182 = vector.broadcast %181 : vector<16x1xf32> to vector<16x128xf32>
    %c0_54 = arith.constant 0 : index
    %c0_55 = arith.constant 0 : index
    %183 = vector.load %arg10[%c0_54, %c0_55] : memref<16x128xf32, #tpu.memory_space<vmem>>, vector<16x128xf32>
    tpu.vector_store %arg10[%c0_54, %c0_55], %182 {strides = array<i32>} : memref<16x128xf32, #tpu.memory_space<vmem>>, vector<16x128xf32>,
    return
  }
  func.func @transform_0(%arg0: i32) -> (i32, i32) {
    %c0_i32 = arith.constant 0 : i32
    %c0_i32_0 = arith.constant 0 : i32
    return %arg0, %c0_i32 : i32, i32
  }
  func.func @transform_1(%arg0: i32) -> (i32, i32) {
    %c0_i32 = arith.constant 0 : i32
    %c0_i32_0 = arith.constant 0 : i32
    return %arg0, %c0_i32 : i32, i32
  }
  func.func @transform_2(%arg0: i32) -> (i32, i32) {
    %c0_i32 = arith.constant 0 : i32
    %c0_i32_0 = arith.constant 0 : i32
    return %arg0, %c0_i32 : i32, i32
  }
  func.func @transform_3(%arg0: i32) -> (i32, i32) {
    %c0_i32 = arith.constant 0 : i32
    %c0_i32_0 = arith.constant 0 : i32
    %c0_i32_1 = arith.constant 0 : i32
    return %c0_i32, %c0_i32_0 : i32, i32
  }
  func.func @transform_4(%arg0: i32) -> (i32, i32) {
    %c0_i32 = arith.constant 0 : i32
    %c0_i32_0 = arith.constant 0 : i32
    %c0_i32_1 = arith.constant 0 : i32
    return %c0_i32, %c0_i32_0 : i32, i32
  }
  func.func @transform_5(%arg0: i32) -> (i32, i32) {
    %c0_i32 = arith.constant 0 : i32
    %c0_i32_0 = arith.constant 0 : i32
    %c0_i32_1 = arith.constant 0 : i32
    return %c0_i32, %c0_i32_0 : i32, i32
  }
  func.func @transform_6(%arg0: i32) -> (i32, i32) {
    %c0_i32 = arith.constant 0 : i32
    %c0_i32_0 = arith.constant 0 : i32
    %c0_i32_1 = arith.constant 0 : i32
    return %c0_i32, %c0_i32_0 : i32, i32
  }
  func.func @transform_7(%arg0: i32) -> (i32, i32) {
    %c0_i32 = arith.constant 0 : i32
    %c0_i32_0 = arith.constant 0 : i32
    %c0_i32_1 = arith.constant 0 : i32
    return %c0_i32, %c0_i32_0 : i32, i32
  }
  func.func @transform_8(%arg0: i32) -> (i32, i32) {
    %c0_i32 = arith.constant 0 : i32
    %c0_i32_0 = arith.constant 0 : i32
    %c0_i32_1 = arith.constant 0 : i32
    return %c0_i32, %c0_i32_0 : i32, i32
  }
  func.func @transform_9(%arg0: i32) -> (i32, i32) {
    %c0_i32 = arith.constant 0 : i32
    %c0_i32_0 = arith.constant 0 : i32
    return %arg0, %c0_i32 : i32, i32
  }
  func.func @transform_10(%arg0: i32) -> (i32, i32) {
    %c0_i32 = arith.constant 0 : i32
    %c0_i32_0 = arith.constant 0 : i32
    return %arg0, %c0_i32 : i32, i32
  }
  func.func @transform_11(%arg0: i32) -> (i32, i32) {
    %c0_i32 = arith.constant 0 : i32
    %c0_i32_0 = arith.constant 0 : i32
    return %arg0, %c0_i32 : i32, i32
  }
}

</mosaic_0001>

<bundles_post_ra>
// kernel: _r_critic_forward_impl.1
= control target key start
LH: loop header
LB: loop body
LE: loop exit
PB: predicated region body
PF: predicated region fallthrough
CT: control target
= control target key end

     0   :  { %v1350_v5 = vmov 0.0   ;;  %vm1351_vm0 = vmmov 0   ;;  %v69_v27 = vlaneseq  ;;  %s1772_s0 = inlined_call_operand.vmem [shape: f32[16,128], index: 0, kind: input, shape index: {}]   ;;  %s1773_s4 = inlined_call_operand.vmem [shape: bf16[128,128], index: 4, kind: input, shape index: {}]   ;;  %s1774_s3 = inlined_call_operand.vmem [shape: f32[2,128], index: 3, kind: input, shape index: {}]   ;;  %s1775_s8 = inlined_call_operand.vmem [shape: f32[16,128], index: 8, kind: input, shape index: {}]   ;;  %s1776_s5 = inlined_call_operand.vmem [shape: bf16[128,128], index: 5, kind: input, shape index: {}]   ;;  %s1777_s6 = inlined_call_operand.vmem [shape: bf16[128,384], index: 6, kind: input, shape index: {}]   ;;  %s1778_s2 = inlined_call_operand.vmem [shape: f32[16,1], index: 2, kind: input, shape index: {}]   ;;  %s1779_s7 = inlined_call_operand.vmem [shape: bf16[128,384], index: 7, kind: input, shape index: {}]   ;;  %s1780_s1 = inlined_call_operand.vmem [shape: f32[16,128], index: 1, kind: input, shape index: {}]   ;;  %s1781_s10 = inlined_call_operand.vmem [shape: f32[16,128], index: 10, kind: output, shape index: {1}]   ;;  %s1782_s11 = inlined_call_operand.vmem [shape: f32[16,128], index: 11, kind: output, shape index: {2}]   ;;  %s1783_s9 = inlined_call_operand.vmem [shape: f32[16,128], index: 9, kind: output, shape index: {0}]  }
   0x1   :  { %v1416_v0 = vld [vmem:[%s1772_s0] sm:$0xff]  ;;  %v1421_v1 = vld [vmem:[%s1772_s0 + $0x8] sm:$0xff]  ;;  %1145 = vmatprep.subr.bf16.mxu0 %v1350_v5  ;;  %1165 = vmatprep.subr.bf16.mxu1 %v1350_v5  ;;  %v1236_v7 = vld [vmem:[%s1773_s4 + $0x10] sm:$0xff]  }
   0x2   :  { %41 = vadd.xlane.f32.xlu0 %v1416_v0  ;;  %v45_v2 = vmul.f32 %v1416_v0, %v1416_v0  ;;  %v46_v3 = vmul.f32 %v1421_v1, %v1421_v1  ;;  %v1234_v4 = vld [vmem:[%s1773_s4] sm:$0xff]   ;;  %v1235_v6 = vld [vmem:[%s1773_s4 + $0x8] sm:$0xff]   ;;  %v1237_v8 = vld [vmem:[%s1773_s4 + $0x18] sm:$0xff]   ;;  %1161 = vmatprep.mubr.msk.bf16.mxu0 %vm1351_vm0, %v1350_v5  ;;  %v1466_v30 = vshrl.u32 %v69_v27, 7 }
   0x3   :  { %1146 = vmatpush3.bf16.msra.mxu0 %v1234_v4  ;;  %v1238_v9 = vld [vmem:[%s1773_s4 + $0x20] sm:$0xff]   ;;  %1181 = vmatprep.mubr.msk.bf16.mxu1 %vm1351_vm0, %v1350_v5  ;;  %v1239_v10 = vld [vmem:[%s1773_s4 + $0x28] sm:$0xff]   ;;  %v1240_v11 = vld [vmem:[%s1773_s4 + $0x30] sm:$0xff]  }
   0x4   :  { %47 = vadd.xlane.f32.xlu1 %v45_v2  ;;  %1147 = vmatprep.subr.bf16.mxu0 %v1350_v5  ;;  %v1241_v12 = vld [vmem:[%s1773_s4 + $0x38] sm:$0xff]   ;;  %v1469_v31 = vsub.s32 0, %v1466_v30  ;;  %v38_v32 = vld [vmem:[%s1774_s3] sm:$0x3]  ;;  %v1477_v37 = vsub.s32 1, %v1466_v30  ;;  %v100_v47 = vsub.s32 6, %v1466_v30 }
   0x5   :  { %v1485_v48 = vld [vmem:[%s1775_s8] sm:$0xff]  ;;  %v1243_v61 = vld [vmem:[%s1776_s5 + $0x8] sm:$0xff]   ;;  %v1244_v62 = vld [vmem:[%s1776_s5 + $0x10] sm:$0xff]  }
   0x6   :  { %43 = vadd.xlane.f32.xlu0 %v1421_v1  ;;  %v72_v36 = vrot.slane %v38_v32, %v1469_v31  ;;  %v78_v42 = vrot.slane %v38_v32, %v1477_v37  ;;  %v101_v49 = vrot.slane %v1485_v48, %v100_v47  ;;  %v1242_v60 = vld [vmem:[%s1776_s5] sm:$0xff]   ;;  %v1245_v63 = vld [vmem:[%s1776_s5 + $0x18] sm:$0xff]   ;;  %v1248_v2 = vld [vmem:[%s1776_s5 + $0x30] sm:$0xff]  }
   0x7   :  { %1148 = vmatpush3.bf16.msra.mxu0 %v1235_v6  ;;  %1166 = vmatpush3.bf16.msra.mxu1 %v1242_v60  ;;  %v1258_v60 = vld [vmem:[%s1777_s6 + $0x30] ss:$12 sps:$4 sm:$0xff]  }
   0x8   :  { %49 = vadd.xlane.f32.xlu1 %v46_v3  ;;  %1149 = vmatprep.subr.bf16.mxu0 %v1350_v5  ;;  %v1249_v3 = vld [vmem:[%s1776_s5 + $0x38] sm:$0xff]  }
   0x9   :  { %1167 = vmatprep.subr.bf16.mxu1 %v1350_v5 }
   0xb   :  { %1150 = vmatpush3.bf16.msra.mxu0 %v1236_v7  ;;  %1168 = vmatpush3.bf16.msra.mxu1 %v1243_v61  ;;  %v1261_v61 = vld [vmem:[%s1777_s6 + $0x38] ss:$12 sps:$4 sm:$0xff]  }
   0xc   :  { %1151 = vmatprep.subr.bf16.mxu0 %v1350_v5  ;;  %1169 = vmatprep.subr.bf16.mxu1 %v1350_v5 }
   0xf   :  { %1152 = vmatpush3.bf16.msra.mxu0 %v1237_v8  ;;  %1170 = vmatpush3.bf16.msra.mxu1 %v1244_v62  ;;  %v1264_v62 = vld [vmem:[%s1777_s6 + $0x4c] ss:$12 sps:$4 sm:$0xff]  }
  0x10   :  { %1153 = vmatprep.subr.bf16.mxu0 %v1350_v5  ;;  %1171 = vmatprep.subr.bf16.mxu1 %v1350_v5 }
  0x13   :  { %1154 = vmatpush3.bf16.msra.mxu0 %v1238_v9  ;;  %1172 = vmatpush3.bf16.msra.mxu1 %v1245_v63  ;;  %v1262_v63 = vld [vmem:[%s1777_s6 + $0x48] ss:$12 sps:$4 sm:$0xff]  }
  0x14   :  { %1155 = vmatprep.subr.bf16.mxu0 %v1350_v5  ;;  %1173 = vmatprep.subr.bf16.mxu1 %v1350_v5 }
  0x17   :  { %1156 = vmatpush3.bf16.msra.mxu0 %v1239_v10 }
  0x18   :  { %1157 = vmatprep.subr.bf16.mxu0 %v1350_v5 }
  0x1b   :  { %1158 = vmatpush3.bf16.msra.mxu0 %v1240_v11 }
  0x1c   :  { %1159 = vmatprep.subr.bf16.mxu0 %v1350_v5 }
  0x1f   :  { %1160 = vmatpush3.bf16.msra.mxu0 %v1241_v12 }
  0x8f   :  { %v42_v13 = vpop.xlane.xlu0 %41 }
  0x90   :  { %v51_v14 = vmul.f32 0.03125, %v42_v13 }
  0x91   :  { %v48_v15 = vpop.xlane.xlu1 %47 }
  0x92   :  { %v55_v16 = vmul.f32 %v51_v14, %v51_v14  ;;  %v53_v17 = vmul.f32 0.03125, %v48_v15  ;;  %v61_v33 = vsub.f32 %v1416_v0, %v51_v14  ;;  %v1246_v0 = vld [vmem:[%s1776_s5 + $0x20] sm:$0xff]  }
  0x93   :  { %v44_v18 = vpop.xlane.xlu0 %43  ;;  %1174 = vmatpush3.bf16.msra.mxu1 %v1246_v0  ;;  %v1265_v0 = vld [vmem:[%s1777_s6 + $0x50] ss:$12 sps:$4 sm:$0xff]  }
  0x94   :  { %v57_v19 = vsub.f32 %v53_v17, %v55_v16  ;;  %v52_v20 = vmul.f32 0.03125, %v44_v18  ;;  %1175 = vmatprep.subr.bf16.mxu1 %v1350_v5 }
  0x95   :  { %v50_v21 = vpop.xlane.xlu1 %49 }
  0x96   :  { %v59_v22 = vmax.f32 %v57_v19, 0.0  ;;  %v56_v23 = vmul.f32 %v52_v20, %v52_v20  ;;  %v54_v24 = vmul.f32 0.03125, %v50_v21  ;;  %v62_v38 = vsub.f32 %v1421_v1, %v52_v20  ;;  %v1247_v1 = vld [vmem:[%s1776_s5 + $0x28] sm:$0xff]  }
  0x97   :  { %1176 = vmatpush3.bf16.msra.mxu1 %v1247_v1  ;;  %v1266_v1 = vld [vmem:[%s1777_s6 + $0x60] ss:$12 sps:$4 sm:$0xff]  }
  0x98   :  { %v63_v25 = vadd.f32 1e-05, %v59_v22  ;;  %v58_v26 = vsub.f32 %v54_v24, %v56_v23  ;;  %1177 = vmatprep.subr.bf16.mxu1 %v1350_v5  ;;  %v224_v22 = vrot.slane %v1485_v48, %v1469_v31 }
  0x9a   :  { %1314 = vrsqrt.f32 %v63_v25  ;;  %v60_v28 = vmax.f32 %v58_v26, 0.0 }
  0x9b   :  { %1178 = vmatpush3.bf16.msra.mxu1 %v1248_v2  ;;  %v1268_v2 = vld [vmem:[%s1777_s6 + $0x64] ss:$12 sps:$4 sm:$0xff]  }
  0x9c   :  { %v64_v29 = vadd.f32 1e-05, %v60_v28  ;;  %1179 = vmatprep.subr.bf16.mxu1 %v1350_v5 }
  0x9e   :  { %1316 = vrsqrt.f32 %v64_v29  ;;  %v230_v29 = vrot.slane %v1485_v48, %v1477_v37 }
  0x9f   :  { %1180 = vmatpush3.bf16.msra.mxu1 %v1249_v3  ;;  %v1269_v3 = vld [vmem:[%s1777_s6 + $0x68] ss:$12 sps:$4 sm:$0xff]  }
  0xa0   :  { %1185 = vmatprep.subr.bf16.mxu1 %v1350_v5 }
  0xa4   :  { %v1315_v34 = vpop.eup %1314 }
  0xa5   :  { %v67_v35 = vmul.f32 %v1315_v34, %v61_v33 }
  0xa7   :  { %v73_v41 = vmul.f32 %v72_v36, %v67_v35 }
  0xa8   :  { %v1317_v39 = vpop.eup %1316 }
  0xa9   :  { %v68_v40 = vmul.f32 %v1317_v39, %v62_v38  ;;  %v79_v44 = vadd.f32 %v78_v42, %v73_v41  ;;  %v252_v38 = vsub.s32 7, %v1466_v30 }
  0xab   :  { %v74_v43 = vmul.f32 %v72_v36, %v68_v40  ;;  %v1352_v36 = vmov 0   ;;  %v253_v39 = vrot.slane %v1485_v48, %v252_v38  ;;  %v381_v38 = vsub.s32 3, %v1466_v30 }
  0xac   :  { %1233 = vset.pattern.permute.xlu1 %v1352_v36  ;;  %1232 = vset.pattern.permute.xlu0 %v1352_v36 }
  0xad   :  { %v80_v45 = vadd.f32 %v78_v42, %v74_v43 }
  0xaf   :  { %v81_v46 = vpack.c.bf16 %v80_v45, %v79_v44 }
  0xb1   :  { %1162 = vmatmul.mubr.bf16.vlgmr.msra.gmra.mrb[0].mxu0 %v81_v46 }
  0xb2   :  { %594 = vmatprep.mubr.bf16.mxu0 %v1352_v36 }
 0x184   :  { %v184_v50 = vpop.f32.mrb[0].mxu0 }
 0x185   :  { %v185_v51 = vadd.f32 %v184_v50, %v101_v49  ;;  %v1163_v52 = vpop.f32.mrb[1].mxu0 }
 0x186   :  { %v187_v53 = vpop.f32.mrb[2].mxu0  ;;  %v1250_v52 = vld [vmem:[%s1777_s6] ss:$12 sps:$4 sm:$0xff]  }
 0x187   :  { %v191_v54 = vmax.f32 %v185_v51, 0.0  ;;  %v188_v55 = vadd.f32 %v187_v53, %v101_v49  ;;  %v1164_v56 = vpop.f32.mrb[3].mxu0  ;;  %v1252_v51 = vld [vmem:[%s1777_s6 + $0x4] ss:$12 sps:$4 sm:$0xff]   ;;  %v1253_v53 = vld [vmem:[%s1777_s6 + $0x8] ss:$12 sps:$4 sm:$0xff]  }
 0x188   :  { %562 = vmatprep.subr.bf16.mxu0 %v1252_v51  ;;  %v1257_v56 = vld [vmem:[%s1777_s6 + $0x20] ss:$12 sps:$4 sm:$0xff]  }
 0x189   :  { %v192_v57 = vmax.f32 %v188_v55, 0.0  ;;  %193 = vadd.xlane.f32.xlu0 %v191_v54  ;;  %v197_v58 = vmul.f32 %v191_v54, %v191_v54  ;;  %563 = vmatpush1.bf16.msra.mxu0 %v1250_v52  ;;  %v1254_v55 = vld [vmem:[%s1777_s6 + $0x18] ss:$12 sps:$4 sm:$0xff]   ;;  %v1282_v51 = vld [vmem:[%s1779_s7] ss:$12 sps:$4 sm:$0xff]  }
 0x18a   :  { %v1285_v52 = vld [vmem:[%s1779_s7 + $0x8] ss:$12 sps:$4 sm:$0xff]  }
 0x18b   :  { %195 = vadd.xlane.f32.xlu1 %v192_v57  ;;  %v198_v59 = vmul.f32 %v192_v57, %v192_v57 }
 0x18d   :  { %199 = vadd.xlane.f32.xlu0 %v197_v58  ;;  %v1260_v58 = vld [vmem:[%s1777_s6 + $0x34] ss:$12 sps:$4 sm:$0xff]  }
 0x18f   :  { %201 = vadd.xlane.f32.xlu1 %v198_v59  ;;  %v387_v59 = vld [vmem:[%s1778_s2] sm:$0xff] }
 0x216   :  { %v194_v4 = vpop.xlane.xlu0 %193 }
 0x217   :  { %v203_v6 = vmul.f32 0.015625, %v194_v4  ;;  %v1272_v4 = vld [vmem:[%s1777_s6 + $0x7c] ss:$12 sps:$4 sm:$0xff]  }
 0x218   :  { %v196_v7 = vpop.xlane.xlu1 %195 }
 0x219   :  { %v204_v8 = vmul.f32 0.015625, %v196_v7  ;;  %v207_v10 = vmul.f32 %v203_v6, %v203_v6  ;;  %v213_v21 = vsub.f32 %v191_v54, %v203_v6  ;;  %v1256_v54 = vld [vmem:[%s1777_s6 + $0x1c] ss:$12 sps:$4 sm:$0xff]   ;;  %v1270_v6 = vld [vmem:[%s1777_s6 + $0x78] ss:$12 sps:$4 sm:$0xff]  }
 0x21a   :  { %v200_v9 = vpop.xlane.xlu0 %199  ;;  %564 = vmatprep.subr.bf16.mxu0 %v1256_v54  ;;  %v1273_v7 = vld [vmem:[%s1777_s6 + $0x80] ss:$12 sps:$4 sm:$0xff]   ;;  %v1286_v54 = vld [vmem:[%s1779_s7 + $0x18] ss:$12 sps:$4 sm:$0xff]  }
 0x21b   :  { %v205_v11 = vmul.f32 0.015625, %v200_v9  ;;  %v208_v13 = vmul.f32 %v204_v8, %v204_v8  ;;  %v214_v24 = vsub.f32 %v192_v57, %v204_v8  ;;  %v388_v57 = vld [vmem:[%s1778_s2 + $0x8] sm:$0xff]  ;;  %565 = vmatpush1.bf16.msra.mxu0 %v1254_v55  ;;  %v1276_v8 = vld [vmem:[%s1777_s6 + $0x94] ss:$12 sps:$4 sm:$0xff]   ;;  %v1274_v9 = vld [vmem:[%s1777_s6 + $0x90] ss:$12 sps:$4 sm:$0xff]  }
 0x21c   :  { %v202_v12 = vpop.xlane.xlu1 %201  ;;  %566 = vmatprep.subr.bf16.mxu0 %v1260_v58  ;;  %v1289_v55 = vld [vmem:[%s1779_s7 + $0x20] ss:$12 sps:$4 sm:$0xff]   ;;  %v1293_v58 = vld [vmem:[%s1779_s7 + $0x38] ss:$12 sps:$4 sm:$0xff]  }
 0x21d   :  { %v209_v14 = vsub.f32 %v205_v11, %v207_v10  ;;  %v206_v15 = vmul.f32 0.015625, %v202_v12  ;;  %v1277_v10 = vld [vmem:[%s1777_s6 + $0x98] ss:$12 sps:$4 sm:$0xff]   ;;  %v1278_v12 = vld [vmem:[%s1777_s6 + $0xa8] ss:$12 sps:$4 sm:$0xff]  }
 0x21e   :  { %v1280_v11 = vld [vmem:[%s1777_s6 + $0xac] ss:$12 sps:$4 sm:$0xff]  }
 0x21f   :  { %v211_v16 = vmax.f32 %v209_v14, 0.0  ;;  %v210_v17 = vsub.f32 %v206_v15, %v208_v13  ;;  %567 = vmatpush1.bf16.msra.mxu0 %v1258_v60  ;;  %v1281_v13 = vld [vmem:[%s1777_s6 + $0xb0] ss:$12 sps:$4 sm:$0xff]  }
 0x220   :  { %568 = vmatprep.subr.bf16.mxu0 %v1264_v62  ;;  %v1284_v14 = vld [vmem:[%s1779_s7 + $0x4] ss:$12 sps:$4 sm:$0xff]   ;;  %v1298_v62 = vld [vmem:[%s1779_s7 + $0x60] ss:$12 sps:$4 sm:$0xff]  }
 0x221   :  { %v215_v18 = vadd.f32 1e-05, %v211_v16  ;;  %v212_v19 = vmax.f32 %v210_v17, 0.0  ;;  %v1297_v60 = vld [vmem:[%s1779_s7 + $0x50] ss:$12 sps:$4 sm:$0xff]  }
 0x223   :  { %1318 = vrsqrt.f32 %v215_v18  ;;  %v216_v20 = vadd.f32 1e-05, %v212_v19  ;;  %569 = vmatpush1.bf16.msra.mxu0 %v1262_v63  ;;  %v1301_v63 = vld [vmem:[%s1779_s7 + $0x68] ss:$12 sps:$4 sm:$0xff]  }
 0x224   :  { %570 = vmatprep.subr.bf16.mxu0 %v1268_v2  ;;  %v1305_v2 = vld [vmem:[%s1779_s7 + $0x80] ss:$12 sps:$4 sm:$0xff]  }
 0x225   :  { %1320 = vrsqrt.f32 %v216_v20 }
 0x227   :  { %571 = vmatpush1.bf16.msra.mxu0 %v1266_v1  ;;  %v1302_v1 = vld [vmem:[%s1779_s7 + $0x78] ss:$12 sps:$4 sm:$0xff]  }
 0x228   :  { %572 = vmatprep.subr.bf16.mxu0 %v1272_v4  ;;  %v1306_v4 = vld [vmem:[%s1779_s7 + $0x90] ss:$12 sps:$4 sm:$0xff]  }
 0x22b   :  { %573 = vmatpush1.bf16.msra.mxu0 %v1270_v6  ;;  %v1309_v6 = vld [vmem:[%s1779_s7 + $0x98] ss:$12 sps:$4 sm:$0xff]  }
 0x22c   :  { %574 = vmatprep.subr.bf16.mxu0 %v1276_v8 }
 0x22d   :  { %v1319_v23 = vpop.eup %1318 }
 0x22e   :  { %v219_v25 = vmul.f32 %v1319_v23, %v213_v21 }
 0x22f   :  { %v1321_v26 = vpop.eup %1320  ;;  %575 = vmatpush1.bf16.msra.mxu0 %v1274_v9  ;;  %v386_v9 = vld [vmem:[%s1780_s1 + $0x8] sm:$0xff] }
 0x230   :  { %v220_v27 = vmul.f32 %v1321_v26, %v214_v24  ;;  %v225_v28 = vmul.f32 %v224_v22, %v219_v25  ;;  %576 = vmatprep.subr.bf16.mxu0 %v1280_v11  ;;  %v1312_v11 = vld [vmem:[%s1779_s7 + $0xac] ss:$12 sps:$4 sm:$0xff]  }
 0x232   :  { %v226_v32 = vmul.f32 %v224_v22, %v220_v27  ;;  %v231_v33 = vadd.f32 %v230_v29, %v225_v28 }
 0x233   :  { %577 = vmatpush1.bf16.msra.mxu0 %v1278_v12 }
 0x234   :  { %v232_v34 = vadd.f32 %v230_v29, %v226_v32  ;;  %807 = vmatprep.subr.bf16.mxu0 %v1284_v14  ;;  %v1310_v14 = vld [vmem:[%s1779_s7 + $0xa8] ss:$12 sps:$4 sm:$0xff]  }
 0x236   :  { %v233_v35 = vpack.c.bf16 %v232_v34, %v231_v33  ;;  %v375_v33 = vsub.s32 2, %v1466_v30 }
 0x238   :  { %1182 = vmatmul.mubr.bf16.vlgmr.msra.gmra.mrb[0].mxu1 %v233_v35  ;;  %v376_v35 = vrot.slane %v1485_v48, %v375_v33 }
 0x239   :  { %1201 = vmatprep.mubr.msk.bf16.mxu1 %vm1351_vm0, %v1350_v5  ;;  %1186 = vmatpush3.bf16.msra.mxu1 %v1253_v53  ;;  %v1288_v53 = vld [vmem:[%s1779_s7 + $0x1c] ss:$12 sps:$4 sm:$0xff]  }
 0x23a   :  { %1187 = vmatprep.subr.bf16.mxu1 %v1350_v5 }
 0x23d   :  { %1188 = vmatpush3.bf16.msra.mxu1 %v1257_v56  ;;  %v1292_v56 = vld [vmem:[%s1779_s7 + $0x34] ss:$12 sps:$4 sm:$0xff]  }
 0x23e   :  { %1189 = vmatprep.subr.bf16.mxu1 %v1350_v5 }
 0x241   :  { %1190 = vmatpush3.bf16.msra.mxu1 %v1261_v61  ;;  %v1300_v61 = vld [vmem:[%s1779_s7 + $0x64] ss:$12 sps:$4 sm:$0xff]  }
 0x242   :  { %1191 = vmatprep.subr.bf16.mxu1 %v1350_v5 }
 0x245   :  { %1192 = vmatpush3.bf16.msra.mxu1 %v1265_v0  ;;  %v1304_v0 = vld [vmem:[%s1779_s7 + $0x7c] ss:$12 sps:$4 sm:$0xff]  }
 0x246   :  { %1193 = vmatprep.subr.bf16.mxu1 %v1350_v5 }
 0x249   :  { %1194 = vmatpush3.bf16.msra.mxu1 %v1269_v3  ;;  %v1308_v3 = vld [vmem:[%s1779_s7 + $0x94] ss:$12 sps:$4 sm:$0xff]  }
 0x24a   :  { %1195 = vmatprep.subr.bf16.mxu1 %v1350_v5 }
 0x24d   :  { %1196 = vmatpush3.bf16.msra.mxu1 %v1273_v7  ;;  %v385_v7 = vld [vmem:[%s1780_s1] sm:$0xff] }
 0x24e   :  { %1197 = vmatprep.subr.bf16.mxu1 %v1350_v5 }
 0x251   :  { %1198 = vmatpush3.bf16.msra.mxu1 %v1277_v10 }
 0x252   :  { %1199 = vmatprep.subr.bf16.mxu1 %v1350_v5 }
 0x255   :  { %1200 = vmatpush3.bf16.msra.mxu1 %v1281_v13 }
 0x256   :  { %1205 = vmatprep.subr.bf16.mxu1 %v1350_v5 }
 0x30b   :  { %v336_v40 = vpop.f32.mrb[0].mxu1 }
 0x30c   :  { %v337_v41 = vadd.f32 %v336_v40, %v253_v39  ;;  %v1183_v42 = vpop.f32.mrb[1].mxu1 }
 0x30d   :  { %v339_v43 = vpop.f32.mrb[2].mxu1 }
 0x30e   :  { %v1531_v44 = vmax.f32 %v337_v41, 0.0  ;;  %v340_v45 = vadd.f32 %v339_v43, %v253_v39  ;;  %v1184_v46 = vpop.f32.mrb[3].mxu1 }
 0x30f   :  { %v382_v46 = vrot.slane %v1485_v48, %v381_v38 }
 0x310   :  { %v1533_v47 = vmax.f32 %v340_v45, 0.0  ;;  %345 = vadd.xlane.f32.xlu0 %v1531_v44  ;;  %v349_v49 = vmul.f32 %v1531_v44, %v1531_v44 }
 0x312   :  { %347 = vadd.xlane.f32.xlu1 %v1533_v47  ;;  %v350_v50 = vmul.f32 %v1533_v47, %v1533_v47 }
 0x314   :  { %351 = vadd.xlane.f32.xlu0 %v349_v49 }
 0x316   :  { %353 = vadd.xlane.f32.xlu1 %v350_v50 }
 0x327   :  { %396 = vperm.xlu1 %1233, %v388_v57   ;;  %v1290_v57 = vld [vmem:[%s1779_s7 + $0x30] ss:$12 sps:$4 sm:$0xff]  }
 0x32a   :  { %391 = vperm.xlu0 %1232, %v387_v59   ;;  %v1294_v59 = vld [vmem:[%s1779_s7 + $0x48] ss:$12 sps:$4 sm:$0xff]  }
 0x39d   :  { %v346_v15 = vpop.xlane.xlu0 %345 }
 0x39e   :  { %v355_v16 = vmul.f32 0.015625, %v346_v15  ;;  %v1313_v15 = vld [vmem:[%s1779_s7 + $0xb0] ss:$12 sps:$4 sm:$0xff]  }
 0x39f   :  { %v348_v17 = vpop.xlane.xlu1 %347 }
 0x3a0   :  { %v356_v18 = vmul.f32 0.015625, %v348_v17  ;;  %v359_v20 = vmul.f32 %v355_v16, %v355_v16  ;;  %v365_v34 = vsub.f32 %v1531_v44, %v355_v16 }
 0x3a1   :  { %v352_v19 = vpop.xlane.xlu0 %351 }
 0x3a2   :  { %v357_v21 = vmul.f32 0.015625, %v352_v19  ;;  %v360_v23 = vmul.f32 %v356_v18, %v356_v18  ;;  %v366_v40 = vsub.f32 %v1533_v47, %v356_v18 }
 0x3a3   :  { %v354_v22 = vpop.xlane.xlu1 %353 }
 0x3a4   :  { %v361_v24 = vsub.f32 %v357_v21, %v359_v20  ;;  %v358_v25 = vmul.f32 0.015625, %v354_v22  ;;  %v1734_v21 = vld [vmem:[%s1775_s8 + $0x8] sm:$0xff] }
 0x3a5   :  { %v896_v22 = vrot.slane %v1734_v21, %v1469_v31 }
 0x3a6   :  { %v363_v26 = vmax.f32 %v361_v24, 0.0  ;;  %v362_v27 = vsub.f32 %v358_v25, %v360_v23  ;;  %v916_v24 = vrot.slane %v1734_v21, %v1477_v37 }
 0x3a7   :  { %v397_v10 = vpop.permute.xlu1 %396 }
 0x3a8   :  { %v367_v28 = vadd.f32 1e-05, %v363_v26  ;;  %v364_v29 = vmax.f32 %v362_v27, 0.0  ;;  %v1720_v13 = vmul.f32 %v397_v10, %v386_v9 }
 0x3a9   :  { %v392_v8 = vpop.permute.xlu0 %391 }
 0x3aa   :  { %1322 = vrsqrt.f32 %v367_v28  ;;  %v368_v32 = vadd.f32 1e-05, %v364_v29  ;;  %v1718_v12 = vmul.f32 %v392_v8, %v385_v7 }
 0x3ac   :  { %1324 = vrsqrt.f32 %v368_v32  ;;  %v646_v16 = vpack.c.bf16 %v1720_v13, %v1718_v12 }
 0x3b4   :  { %v1323_v39 = vpop.eup %1322 }
 0x3b5   :  { %v371_v41 = vmul.f32 %v1323_v39, %v365_v34 }
 0x3b6   :  { %v1325_v42 = vpop.eup %1324 }
 0x3b7   :  { %v372_v43 = vmul.f32 %v1325_v42, %v366_v40  ;;  %v377_v45 = vmul.f32 %v376_v35, %v371_v41 }
 0x3b9   :  { %v378_v49 = vmul.f32 %v376_v35, %v372_v43  ;;  %v383_v50 = vadd.f32 %v382_v46, %v377_v45 }
 0x3bb   :  { %v384_v44 = vadd.f32 %v382_v46, %v378_v49 }
 0x3bd   :  { %v401_v47 = vpack.c.bf16 %v384_v44, %v383_v50  ;;  %v940_v44 = vrot.slane %v1734_v21, %v381_v38 }
 0x3bf   :  { %595 = vmatmul.mubr.bf16.vlgmr.msra.gmra.mrb[4].mxu0 %v401_v47  ;;  %1202 = vmatmul.mubr.bf16.vlgmr.msra.gmra.mrb[4].mxu1 %v401_v47 }
 0x3c0   :  { %808 = vmatpush1.bf16.msra.mxu0 %v1282_v51  ;;  %1206 = vmatpush3.bf16.msra.mxu1 %v1285_v52  ;;  %v934_v52 = vrot.slane %v1734_v21, %v375_v33 }
 0x3c1   :  { %809 = vmatprep.subr.bf16.mxu0 %v1288_v53  ;;  %1207 = vmatprep.subr.bf16.mxu1 %v1350_v5 }
 0x3c2   :  { %839 = vmatprep.mubr.bf16.mxu0 %v1352_v36  ;;  %1221 = vmatprep.mubr.msk.bf16.mxu1 %vm1351_vm0, %v1350_v5  ;;  %v1296_v36 = vld [vmem:[%s1779_s7 + $0x4c] ss:$12 sps:$4 sm:$0xff]  }
 0x3c4   :  { %810 = vmatpush1.bf16.msra.mxu0 %v1286_v54  ;;  %1208 = vmatpush3.bf16.msra.mxu1 %v1289_v55 }
 0x3c5   :  { %811 = vmatprep.subr.bf16.mxu0 %v1292_v56  ;;  %1209 = vmatprep.subr.bf16.mxu1 %v1350_v5 }
 0x3c8   :  { %812 = vmatpush1.bf16.msra.mxu0 %v1290_v57  ;;  %1210 = vmatpush3.bf16.msra.mxu1 %v1293_v58 }
 0x3c9   :  { %813 = vmatprep.subr.bf16.mxu0 %v1296_v36  ;;  %1211 = vmatprep.subr.bf16.mxu1 %v1350_v5 }
 0x3cc   :  { %814 = vmatpush1.bf16.msra.mxu0 %v1294_v59  ;;  %1212 = vmatpush3.bf16.msra.mxu1 %v1297_v60 }
 0x3cd   :  { %815 = vmatprep.subr.bf16.mxu0 %v1300_v61  ;;  %1213 = vmatprep.subr.bf16.mxu1 %v1350_v5 }
 0x3d0   :  { %816 = vmatpush1.bf16.msra.mxu0 %v1298_v62  ;;  %1214 = vmatpush3.bf16.msra.mxu1 %v1301_v63 }
 0x3d1   :  { %817 = vmatprep.subr.bf16.mxu0 %v1304_v0  ;;  %1215 = vmatprep.subr.bf16.mxu1 %v1350_v5 }
 0x3d4   :  { %818 = vmatpush1.bf16.msra.mxu0 %v1302_v1  ;;  %1216 = vmatpush3.bf16.msra.mxu1 %v1305_v2 }
 0x3d5   :  { %819 = vmatprep.subr.bf16.mxu0 %v1308_v3  ;;  %1217 = vmatprep.subr.bf16.mxu1 %v1350_v5 }
 0x3d8   :  { %820 = vmatpush1.bf16.msra.mxu0 %v1306_v4  ;;  %1218 = vmatpush3.bf16.msra.mxu1 %v1309_v6 }
 0x3d9   :  { %821 = vmatprep.subr.bf16.mxu0 %v1312_v11  ;;  %1219 = vmatprep.subr.bf16.mxu1 %v1350_v5 }
 0x3dc   :  { %822 = vmatpush1.bf16.msra.mxu0 %v1310_v14  ;;  %1220 = vmatpush3.bf16.msra.mxu1 %v1313_v15 }
 0x3df   :  { %840 = vmatmul.mubr.bf16.vlgmr.msra.gmra.mrb[4].mxu0 %v646_v16  ;;  %1222 = vmatmul.mubr.bf16.vlgmr.msra.gmra.mrb[8].mxu1 %v646_v16 }
 0x492   :  { %v639_v17 = vpop.f32.mrb[4].mxu1 }
 0x493   :  { %v1203_v18 = vpop.f32.mrb[5].mxu1  ;;  %v935_v56 = vadd.f32 %v934_v52, %v639_v17 }
 0x494   :  { %v642_v19 = vpop.f32.mrb[6].mxu1 }
 0x495   :  { %v1204_v20 = vpop.f32.mrb[7].mxu1  ;;  %v936_v59 = vadd.f32 %v934_v52, %v642_v19 }
 0x4b2   :  { %v841_v5 = vpop.f32.mrb[4].mxu0  ;;  %v884_v23 = vpop.f32.mrb[8].mxu1 }
 0x4b3   :  { %v897_v25 = vadd.f32 %v896_v22, %v841_v5  ;;  %v843_v26 = vpop.f32.mrb[5].mxu0  ;;  %v1223_v27 = vpop.f32.mrb[9].mxu1  ;;  %v941_v53 = vadd.f32 %v940_v44, %v884_v23 }
 0x4b4   :  { %v845_v28 = vpop.f32.mrb[6].mxu0  ;;  %v887_v29 = vpop.f32.mrb[10].mxu1  ;;  %v917_v40 = vadd.f32 %v916_v24, %v843_v26 }
 0x4b5   :  { %v1105_v32 = vmul.f32 -1.442695, %v897_v25  ;;  %v898_v34 = vadd.f32 %v896_v22, %v845_v28  ;;  %v847_v35 = vpop.f32.mrb[7].mxu0  ;;  %v1224_v39 = vpop.f32.mrb[11].mxu1  ;;  %v942_v58 = vadd.f32 %v940_v44, %v887_v29  ;;  %v989_v28 = vsub.s32 4, %v1466_v30 }
 0x4b6   :  { %v918_v42 = vadd.f32 %v916_v24, %v847_v35  ;;  %v1107_v31 = vmul.f32 -1.442695, %v917_v40  ;;  %v995_v29 = vsub.s32 5, %v1466_v30 }
 0x4b7   :  { %1326 = vpow2.f32 %v1105_v32  ;;  %v1106_v41 = vmul.f32 -1.442695, %v898_v34  ;;  %v990_v34 = vrot.slane %v1485_v48, %v989_v28 }
 0x4b8   :  { %v1108_v43 = vmul.f32 -1.442695, %v918_v42  ;;  %v996_v40 = vrot.slane %v1485_v48, %v995_v29  ;;  %v1014_v48 = vrot.slane %v1734_v21, %v995_v29 }
 0x4b9   :  { %1328 = vpow2.f32 %v1106_v41 }
 0x4ba   :  { %1330 = vpow2.f32 %v1107_v31  ;;  %v1004_v31 = vrot.slane %v1734_v21, %v989_v28 }
 0x4bb   :  { %1332 = vpow2.f32 %v1108_v43 }
 0x4c1   :  { %v1327_v45 = vpop.eup %1326 }
 0x4c2   :  { %v905_v37 = vadd.f32 1.0, %v1327_v45 }
 0x4c3   :  { %v1329_v46 = vpop.eup %1328 }
 0x4c4   :  { %1334 = vrcp.f32 %v905_v37  ;;  %v906_v49 = vadd.f32 1.0, %v1329_v46  ;;  %v1331_v50 = vpop.eup %1330 }
 0x4c5   :  { %v1333_v51 = vpop.eup %1332  ;;  %v925_v47 = vadd.f32 1.0, %v1331_v50 }
 0x4c6   :  { %1336 = vrcp.f32 %v906_v49  ;;  %v926_v54 = vadd.f32 1.0, %v1333_v51 }
 0x4c7   :  { %1338 = vrcp.f32 %v925_v47 }
 0x4c8   :  { %1340 = vrcp.f32 %v926_v54 }
 0x4ce   :  { %v1335_v55 = vpop.eup %1334 }
 0x4cf   :  { %v943_v57 = vmul.f32 %v1335_v55, %v941_v53 }
 0x4d0   :  { %v1337_v36 = vpop.eup %1336 }
 0x4d1   :  { %v945_v60 = vadd.f32 %v943_v57, %v935_v56  ;;  %v944_v61 = vmul.f32 %v1337_v36, %v942_v58  ;;  %v1339_v62 = vpop.eup %1338 }
 0x4d2   :  { %v1341_v63 = vpop.eup %1340  ;;  %v949_v0 = vsub.f32 1.0, %v1339_v62  ;;  %v953_v2 = vmul.f32 %v1339_v62, %v1718_v12 }
 0x4d3   :  { %1342 = vtanh.f32 %v945_v60  ;;  %v946_v38 = vadd.f32 %v944_v61, %v936_v59  ;;  %v950_v3 = vsub.f32 1.0, %v1341_v63  ;;  %v954_v8 = vmul.f32 %v1341_v63, %v1720_v13 }
 0x4d5   :  { %1344 = vtanh.f32 %v946_v38 }
 0x4dd   :  { %v1343_v33 = vpop.eup %1342 }
 0x4de   :  { %v951_v1 = vmul.f32 %v1343_v33, %v949_v0 }
 0x4df   :  { %v1345_v4 = vpop.eup %1344 }
 0x4e0   :  { %v955_v6 = vadd.f32 %v953_v2, %v951_v1  ;;  %v952_v7 = vmul.f32 %v1345_v4, %v950_v3 }
 0x4e2   :  { %959 = vadd.xlane.f32.xlu1 %v955_v6  ;;  %957 = vst [vmem:[%s1781_s10] sm:$0xff] %v955_v6  ;;  %v956_v9 = vadd.f32 %v954_v8, %v952_v7  ;;  %v963_v10 = vmul.f32 %v955_v6, %v955_v6 }
 0x4e4   :  { %961 = vadd.xlane.f32.xlu0 %v956_v9  ;;  %958 = vst [vmem:[%s1781_s10 + $0x8] sm:$0xff] %v956_v9  ;;  %v964_v11 = vmul.f32 %v956_v9, %v956_v9 }
 0x4e6   :  { %965 = vadd.xlane.f32.xlu1 %v963_v10 }
 0x4ea   :  { %967 = vadd.xlane.f32.xlu1 %v964_v11 }
 0x56f   :  { %v960_v12 = vpop.xlane.xlu1 %959 }
 0x570   :  { %v969_v14 = vmul.f32 0.015625, %v960_v12 }
 0x571   :  { %v962_v15 = vpop.xlane.xlu0 %961 }
 0x572   :  { %v973_v13 = vmul.f32 %v969_v14, %v969_v14  ;;  %v970_v17 = vmul.f32 0.015625, %v962_v15  ;;  %v979_v32 = vsub.f32 %v955_v6, %v969_v14 }
 0x573   :  { %v966_v16 = vpop.xlane.xlu1 %965 }
 0x574   :  { %v971_v18 = vmul.f32 0.015625, %v966_v16  ;;  %v974_v22 = vmul.f32 %v970_v17, %v970_v17  ;;  %v980_v41 = vsub.f32 %v956_v9, %v970_v17 }
 0x576   :  { %v975_v19 = vsub.f32 %v971_v18, %v973_v13 }
 0x577   :  { %v968_v20 = vpop.xlane.xlu1 %967 }
 0x578   :  { %v977_v5 = vmax.f32 %v975_v19, 0.0  ;;  %v972_v23 = vmul.f32 0.015625, %v968_v20 }
 0x57a   :  { %v981_v24 = vadd.f32 1e-05, %v977_v5  ;;  %v976_v25 = vsub.f32 %v972_v23, %v974_v22 }
 0x57c   :  { %1346 = vrsqrt.f32 %v981_v24  ;;  %v978_v26 = vmax.f32 %v976_v25, 0.0 }
 0x57e   :  { %v982_v27 = vadd.f32 1e-05, %v978_v26 }
 0x580   :  { %1348 = vrsqrt.f32 %v982_v27 }
 0x586   :  { %v1347_v35 = vpop.eup %1346 }
 0x587   :  { %v985_v39 = vmul.f32 %v1347_v35, %v979_v32 }
 0x589   :  { %v991_v42 = vmul.f32 %v990_v34, %v985_v39 }
 0x58a   :  { %v1349_v43 = vpop.eup %1348 }
 0x58b   :  { %v997_v45 = vadd.f32 %v996_v40, %v991_v42  ;;  %v986_v37 = vmul.f32 %v1349_v43, %v980_v41 }
 0x58d   :  { %999 = vst [vmem:[%s1782_s11] sm:$0xff] %v997_v45  ;;  %v1005_v46 = vmul.f32 %v1004_v31, %v997_v45  ;;  %v992_v30 = vmul.f32 %v990_v34, %v986_v37 }
 0x58f   :  { %1007 = vadd.xlane.f32.xlu1 %v1005_v46  ;;  %v998_v49 = vadd.f32 %v996_v40, %v992_v30 }
 0x591   :  { %v1006_v50 = vmul.f32 %v1004_v31, %v998_v49  ;;  %1000 = vst [vmem:[%s1782_s11 + $0x8] sm:$0xff] %v998_v49 }
 0x593   :  { %1009 = vadd.xlane.f32.xlu1 %v1006_v50 }
 0x61c   :  { %v1008_v44 = vpop.xlane.xlu1 %1007 }
 0x61d   :  { %v1015_v51 = vadd.f32 %v1014_v48, %v1008_v44 }
 0x61f   :  { %1019 = vperm.xlu1 %1233, %v1015_v51  }
 0x620   :  { %v1010_v52 = vpop.xlane.xlu1 %1009 }
 0x621   :  { %v1016_v47 = vadd.f32 %v1014_v48, %v1010_v52 }
 0x623   :  { %1024 = vperm.xlu0 %1232, %v1016_v47  }
 0x69e   :  { %v1020_v53 = vpop.permute.xlu1 %1019 }
 0x69f   :  { %1027 = vst [vmem:[%s1783_s9] sm:$0xff] %v1020_v53 }
 0x6a2   :  { %v1025_v54 = vpop.permute.xlu0 %1024 }
 0x6a3   :  { %1028 = vst [vmem:[%s1783_s9 + $0x8] sm:$0xff] %v1025_v54 }

// kernel: _r_critic_forward_impl.1
= control target key start
LH: loop header
LB: loop body
LE: loop exit
PB: predicated region body
PF: predicated region fallthrough
CT: control target
= control target key end

     0   :  { %v1350_v5 = vmov 0.0   ;;  %vm1351_vm0 = vmmov 0   ;;  %v69_v27 = vlaneseq  ;;  %s1772_s0 = inlined_call_operand.vmem [shape: f32[16,128], index: 0, kind: input, shape index: {}]   ;;  %s1773_s4 = inlined_call_operand.vmem [shape: bf16[128,128], index: 4, kind: input, shape index: {}]   ;;  %s1774_s3 = inlined_call_operand.vmem [shape: f32[2,128], index: 3, kind: input, shape index: {}]   ;;  %s1775_s8 = inlined_call_operand.vmem [shape: f32[16,128], index: 8, kind: input, shape index: {}]   ;;  %s1776_s5 = inlined_call_operand.vmem [shape: bf16[128,128], index: 5, kind: input, shape index: {}]   ;;  %s1777_s6 = inlined_call_operand.vmem [shape: bf16[128,384], index: 6, kind: input, shape index: {}]   ;;  %s1778_s2 = inlined_call_operand.vmem [shape: f32[16,1], index: 2, kind: input, shape index: {}]   ;;  %s1779_s7 = inlined_call_operand.vmem [shape: bf16[128,384], index: 7, kind: input, shape index: {}]   ;;  %s1780_s1 = inlined_call_operand.vmem [shape: f32[16,128], index: 1, kind: input, shape index: {}]   ;;  %s1781_s10 = inlined_call_operand.vmem [shape: f32[16,128], index: 10, kind: output, shape index: {1}]   ;;  %s1782_s11 = inlined_call_operand.vmem [shape: f32[16,128], index: 11, kind: output, shape index: {2}]   ;;  %s1783_s9 = inlined_call_operand.vmem [shape: f32[16,128], index: 9, kind: output, shape index: {0}]  }
   0x1   :  { %v1416_v0 = vld [vmem:[%s1772_s0] sm:$0xff]  ;;  %v1421_v1 = vld [vmem:[%s1772_s0 + $0x8] sm:$0xff]  ;;  %1145 = vmatprep.subr.bf16.mxu0 %v1350_v5  ;;  %1165 = vmatprep.subr.bf16.mxu1 %v1350_v5  ;;  %v1236_v7 = vld [vmem:[%s1773_s4 + $0x10] sm:$0xff]  }
   0x2   :  { %41 = vadd.xlane.f32.xlu0 %v1416_v0  ;;  %v45_v2 = vmul.f32 %v1416_v0, %v1416_v0  ;;  %v46_v3 = vmul.f32 %v1421_v1, %v1421_v1  ;;  %v1234_v4 = vld [vmem:[%s1773_s4] sm:$0xff]   ;;  %v1235_v6 = vld [vmem:[%s1773_s4 + $0x8] sm:$0xff]   ;;  %v1237_v8 = vld [vmem:[%s1773_s4 + $0x18] sm:$0xff]   ;;  %1161 = vmatprep.mubr.msk.bf16.mxu0 %vm1351_vm0, %v1350_v5  ;;  %v1466_v30 = vshrl.u32 %v69_v27, 7 }
   0x3   :  { %1146 = vmatpush3.bf16.msra.mxu0 %v1234_v4  ;;  %v1238_v9 = vld [vmem:[%s1773_s4 + $0x20] sm:$0xff]   ;;  %1181 = vmatprep.mubr.msk.bf16.mxu1 %vm1351_vm0, %v1350_v5  ;;  %v1239_v10 = vld [vmem:[%s1773_s4 + $0x28] sm:$0xff]   ;;  %v1240_v11 = vld [vmem:[%s1773_s4 + $0x30] sm:$0xff]  }
   0x4   :  { %47 = vadd.xlane.f32.xlu1 %v45_v2  ;;  %1147 = vmatprep.subr.bf16.mxu0 %v1350_v5  ;;  %v1241_v12 = vld [vmem:[%s1773_s4 + $0x38] sm:$0xff]   ;;  %v1469_v31 = vsub.s32 0, %v1466_v30  ;;  %v38_v32 = vld [vmem:[%s1774_s3] sm:$0x3]  ;;  %v1477_v37 = vsub.s32 1, %v1466_v30  ;;  %v100_v47 = vsub.s32 6, %v1466_v30 }
   0x5   :  { %v1485_v48 = vld [vmem:[%s1775_s8] sm:$0xff]  ;;  %v1243_v61 = vld [vmem:[%s1776_s5 + $0x8] sm:$0xff]   ;;  %v1244_v62 = vld [vmem:[%s1776_s5 + $0x10] sm:$0xff]  }
   0x6   :  { %43 = vadd.xlane.f32.xlu0 %v1421_v1  ;;  %v72_v36 = vrot.slane %v38_v32, %v1469_v31  ;;  %v78_v42 = vrot.slane %v38_v32, %v1477_v37  ;;  %v101_v49 = vrot.slane %v1485_v48, %v100_v47  ;;  %v1242_v60 = vld [vmem:[%s1776_s5] sm:$0xff]   ;;  %v1245_v63 = vld [vmem:[%s1776_s5 + $0x18] sm:$0xff]   ;;  %v1248_v2 = vld [vmem:[%s1776_s5 + $0x30] sm:$0xff]  }
   0x7   :  { %1148 = vmatpush3.bf16.msra.mxu0 %v1235_v6  ;;  %1166 = vmatpush3.bf16.msra.mxu1 %v1242_v60  ;;  %v1258_v60 = vld [vmem:[%s1777_s6 + $0x30] ss:$12 sps:$4 sm:$0xff]  }
   0x8   :  { %49 = vadd.xlane.f32.xlu1 %v46_v3  ;;  %1149 = vmatprep.subr.bf16.mxu0 %v1350_v5  ;;  %v1249_v3 = vld [vmem:[%s1776_s5 + $0x38] sm:$0xff]  }
   0x9   :  { %1167 = vmatprep.subr.bf16.mxu1 %v1350_v5 }
   0xb   :  { %1150 = vmatpush3.bf16.msra.mxu0 %v1236_v7  ;;  %1168 = vmatpush3.bf16.msra.mxu1 %v1243_v61  ;;  %v1261_v61 = vld [vmem:[%s1777_s6 + $0x38] ss:$12 sps:$4 sm:$0xff]  }
   0xc   :  { %1151 = vmatprep.subr.bf16.mxu0 %v1350_v5  ;;  %1169 = vmatprep.subr.bf16.mxu1 %v1350_v5 }
   0xf   :  { %1152 = vmatpush3.bf16.msra.mxu0 %v1237_v8  ;;  %1170 = vmatpush3.bf16.msra.mxu1 %v1244_v62  ;;  %v1264_v62 = vld [vmem:[%s1777_s6 + $0x4c] ss:$12 sps:$4 sm:$0xff]  }
  0x10   :  { %1153 = vmatprep.subr.bf16.mxu0 %v1350_v5  ;;  %1171 = vmatprep.subr.bf16.mxu1 %v1350_v5 }
  0x13   :  { %1154 = vmatpush3.bf16.msra.mxu0 %v1238_v9  ;;  %1172 = vmatpush3.bf16.msra.mxu1 %v1245_v63  ;;  %v1262_v63 = vld [vmem:[%s1777_s6 + $0x48] ss:$12 sps:$4 sm:$0xff]  }
  0x14   :  { %1155 = vmatprep.subr.bf16.mxu0 %v1350_v5  ;;  %1173 = vmatprep.subr.bf16.mxu1 %v1350_v5 }
  0x17   :  { %1156 = vmatpush3.bf16.msra.mxu0 %v1239_v10 }
  0x18   :  { %1157 = vmatprep.subr.bf16.mxu0 %v1350_v5 }
  0x1b   :  { %1158 = vmatpush3.bf16.msra.mxu0 %v1240_v11 }
  0x1c   :  { %1159 = vmatprep.subr.bf16.mxu0 %v1350_v5 }
  0x1f   :  { %1160 = vmatpush3.bf16.msra.mxu0 %v1241_v12 }
  0x8f   :  { %v42_v13 = vpop.xlane.xlu0 %41 }
  0x90   :  { %v51_v14 = vmul.f32 0.03125, %v42_v13 }
  0x91   :  { %v48_v15 = vpop.xlane.xlu1 %47 }
  0x92   :  { %v55_v16 = vmul.f32 %v51_v14, %v51_v14  ;;  %v53_v17 = vmul.f32 0.03125, %v48_v15  ;;  %v61_v33 = vsub.f32 %v1416_v0, %v51_v14  ;;  %v1246_v0 = vld [vmem:[%s1776_s5 + $0x20] sm:$0xff]  }
  0x93   :  { %v44_v18 = vpop.xlane.xlu0 %43  ;;  %1174 = vmatpush3.bf16.msra.mxu1 %v1246_v0  ;;  %v1265_v0 = vld [vmem:[%s1777_s6 + $0x50] ss:$12 sps:$4 sm:$0xff]  }
  0x94   :  { %v57_v19 = vsub.f32 %v53_v17, %v55_v16  ;;  %v52_v20 = vmul.f32 0.03125, %v44_v18  ;;  %1175 = vmatprep.subr.bf16.mxu1 %v1350_v5 }
  0x95   :  { %v50_v21 = vpop.xlane.xlu1 %49 }
  0x96   :  { %v59_v22 = vmax.f32 %v57_v19, 0.0  ;;  %v56_v23 = vmul.f32 %v52_v20, %v52_v20  ;;  %v54_v24 = vmul.f32 0.03125, %v50_v21  ;;  %v62_v38 = vsub.f32 %v1421_v1, %v52_v20  ;;  %v1247_v1 = vld [vmem:[%s1776_s5 + $0x28] sm:$0xff]  }
  0x97   :  { %1176 = vmatpush3.bf16.msra.mxu1 %v1247_v1  ;;  %v1266_v1 = vld [vmem:[%s1777_s6 + $0x60] ss:$12 sps:$4 sm:$0xff]  }
  0x98   :  { %v63_v25 = vadd.f32 1e-05, %v59_v22  ;;  %v58_v26 = vsub.f32 %v54_v24, %v56_v23  ;;  %1177 = vmatprep.subr.bf16.mxu1 %v1350_v5  ;;  %v224_v22 = vrot.slane %v1485_v48, %v1469_v31 }
  0x9a   :  { %1314 = vrsqrt.f32 %v63_v25  ;;  %v60_v28 = vmax.f32 %v58_v26, 0.0 }
  0x9b   :  { %1178 = vmatpush3.bf16.msra.mxu1 %v1248_v2  ;;  %v1268_v2 = vld [vmem:[%s1777_s6 + $0x64] ss:$12 sps:$4 sm:$0xff]  }
  0x9c   :  { %v64_v29 = vadd.f32 1e-05, %v60_v28  ;;  %1179 = vmatprep.subr.bf16.mxu1 %v1350_v5 }
  0x9e   :  { %1316 = vrsqrt.f32 %v64_v29  ;;  %v230_v29 = vrot.slane %v1485_v48, %v1477_v37 }
  0x9f   :  { %1180 = vmatpush3.bf16.msra.mxu1 %v1249_v3  ;;  %v1269_v3 = vld [vmem:[%s1777_s6 + $0x68] ss:$12 sps:$4 sm:$0xff]  }
  0xa0   :  { %1185 = vmatprep.subr.bf16.mxu1 %v1350_v5 }
  0xa4   :  { %v1315_v34 = vpop.eup %1314 }
  0xa5   :  { %v67_v35 = vmul.f32 %v1315_v34, %v61_v33 }
  0xa7   :  { %v73_v41 = vmul.f32 %v72_v36, %v67_v35 }
  0xa8   :  { %v1317_v39 = vpop.eup %1316 }
  0xa9   :  { %v68_v40 = vmul.f32 %v1317_v39, %v62_v38  ;;  %v79_v44 = vadd.f32 %v78_v42, %v73_v41  ;;  %v252_v38 = vsub.s32 7, %v1466_v30 }
  0xab   :  { %v74_v43 = vmul.f32 %v72_v36, %v68_v40  ;;  %v1352_v36 = vmov 0   ;;  %v253_v39 = vrot.slane %v1485_v48, %v252_v38  ;;  %v381_v38 = vsub.s32 3, %v1466_v30 }
  0xac   :  { %1233 = vset.pattern.permute.xlu1 %v1352_v36  ;;  %1232 = vset.pattern.permute.xlu0 %v1352_v36 }
  0xad   :  { %v80_v45 = vadd.f32 %v78_v42, %v74_v43 }
  0xaf   :  { %v81_v46 = vpack.c.bf16 %v80_v45, %v79_v44 }
  0xb1   :  { %1162 = vmatmul.mubr.bf16.vlgmr.msra.gmra.mrb[0].mxu0 %v81_v46 }
  0xb2   :  { %594 = vmatprep.mubr.bf16.mxu0 %v1352_v36 }
 0x184   :  { %v184_v50 = vpop.f32.mrb[0].mxu0 }
 0x185   :  { %v185_v51 = vadd.f32 %v184_v50, %v101_v49  ;;  %v1163_v52 = vpop.f32.mrb[1].mxu0 }
 0x186   :  { %v187_v53 = vpop.f32.mrb[2].mxu0  ;;  %v1250_v52 = vld [vmem:[%s1777_s6] ss:$12 sps:$4 sm:$0xff]  }
 0x187   :  { %v191_v54 = vmax.f32 %v185_v51, 0.0  ;;  %v188_v55 = vadd.f32 %v187_v53, %v101_v49  ;;  %v1164_v56 = vpop.f32.mrb[3].mxu0  ;;  %v1252_v51 = vld [vmem:[%s1777_s6 + $0x4] ss:$12 sps:$4 sm:$0xff]   ;;  %v1253_v53 = vld [vmem:[%s1777_s6 + $0x8] ss:$12 sps:$4 sm:$0xff]  }
 0x188   :  { %562 = vmatprep.subr.bf16.mxu0 %v1252_v51  ;;  %v1257_v56 = vld [vmem:[%s1777_s6 + $0x20] ss:$12 sps:$4 sm:$0xff]  }
 0x189   :  { %v192_v57 = vmax.f32 %v188_v55, 0.0  ;;  %193 = vadd.xlane.f32.xlu0 %v191_v54  ;;  %v197_v58 = vmul.f32 %v191_v54, %v191_v54  ;;  %563 = vmatpush1.bf16.msra.mxu0 %v1250_v52  ;;  %v1254_v55 = vld [vmem:[%s1777_s6 + $0x18] ss:$12 sps:$4 sm:$0xff]   ;;  %v1282_v51 = vld [vmem:[%s1779_s7] ss:$12 sps:$4 sm:$0xff]  }
 0x18a   :  { %v1285_v52 = vld [vmem:[%s1779_s7 + $0x8] ss:$12 sps:$4 sm:$0xff]  }
 0x18b   :  { %195 = vadd.xlane.f32.xlu1 %v192_v57  ;;  %v198_v59 = vmul.f32 %v192_v57, %v192_v57 }
 0x18d   :  { %199 = vadd.xlane.f32.xlu0 %v197_v58  ;;  %v1260_v58 = vld [vmem:[%s1777_s6 + $0x34] ss:$12 sps:$4 sm:$0xff]  }
 0x18f   :  { %201 = vadd.xlane.f32.xlu1 %v198_v59  ;;  %v387_v59 = vld [vmem:[%s1778_s2] sm:$0xff] }
 0x216   :  { %v194_v4 = vpop.xlane.xlu0 %193 }
 0x217   :  { %v203_v6 = vmul.f32 0.015625, %v194_v4  ;;  %v1272_v4 = vld [vmem:[%s1777_s6 + $0x7c] ss:$12 sps:$4 sm:$0xff]  }
 0x218   :  { %v196_v7 = vpop.xlane.xlu1 %195 }
 0x219   :  { %v204_v8 = vmul.f32 0.015625, %v196_v7  ;;  %v207_v10 = vmul.f32 %v203_v6, %v203_v6  ;;  %v213_v21 = vsub.f32 %v191_v54, %v203_v6  ;;  %v1256_v54 = vld [vmem:[%s1777_s6 + $0x1c] ss:$12 sps:$4 sm:$0xff]   ;;  %v1270_v6 = vld [vmem:[%s1777_s6 + $0x78] ss:$12 sps:$4 sm:$0xff]  }
 0x21a   :  { %v200_v9 = vpop.xlane.xlu0 %199  ;;  %564 = vmatprep.subr.bf16.mxu0 %v1256_v54  ;;  %v1273_v7 = vld [vmem:[%s1777_s6 + $0x80] ss:$12 sps:$4 sm:$0xff]   ;;  %v1286_v54 = vld [vmem:[%s1779_s7 + $0x18] ss:$12 sps:$4 sm:$0xff]  }
 0x21b   :  { %v205_v11 = vmul.f32 0.015625, %v200_v9  ;;  %v208_v13 = vmul.f32 %v204_v8, %v204_v8  ;;  %v214_v24 = vsub.f32 %v192_v57, %v204_v8  ;;  %v388_v57 = vld [vmem:[%s1778_s2 + $0x8] sm:$0xff]  ;;  %565 = vmatpush1.bf16.msra.mxu0 %v1254_v55  ;;  %v1276_v8 = vld [vmem:[%s1777_s6 + $0x94] ss:$12 sps:$4 sm:$0xff]   ;;  %v1274_v9 = vld [vmem:[%s1777_s6 + $0x90] ss:$12 sps:$4 sm:$0xff]  }
 0x21c   :  { %v202_v12 = vpop.xlane.xlu1 %201  ;;  %566 = vmatprep.subr.bf16.mxu0 %v1260_v58  ;;  %v1289_v55 = vld [vmem:[%s1779_s7 + $0x20] ss:$12 sps:$4 sm:$0xff]   ;;  %v1293_v58 = vld [vmem:[%s1779_s7 + $0x38] ss:$12 sps:$4 sm:$0xff]  }
 0x21d   :  { %v209_v14 = vsub.f32 %v205_v11, %v207_v10  ;;  %v206_v15 = vmul.f32 0.015625, %v202_v12  ;;  %v1277_v10 = vld [vmem:[%s1777_s6 + $0x98] ss:$12 sps:$4 sm:$0xff]   ;;  %v1278_v12 = vld [vmem:[%s1777_s6 + $0xa8] ss:$12 sps:$4 sm:$0xff]  }
 0x21e   :  { %v1280_v11 = vld [vmem:[%s1777_s6 + $0xac] ss:$12 sps:$4 sm:$0xff]  }
 0x21f   :  { %v211_v16 = vmax.f32 %v209_v14, 0.0  ;;  %v210_v17 = vsub.f32 %v206_v15, %v208_v13  ;;  %567 = vmatpush1.bf16.msra.mxu0 %v1258_v60  ;;  %v1281_v13 = vld [vmem:[%s1777_s6 + $0xb0] ss:$12 sps:$4 sm:$0xff]  }
 0x220   :  { %568 = vmatprep.subr.bf16.mxu0 %v1264_v62  ;;  %v1284_v14 = vld [vmem:[%s1779_s7 + $0x4] ss:$12 sps:$4 sm:$0xff]   ;;  %v1298_v62 = vld [vmem:[%s1779_s7 + $0x60] ss:$12 sps:$4 sm:$0xff]  }
 0x221   :  { %v215_v18 = vadd.f32 1e-05, %v211_v16  ;;  %v212_v19 = vmax.f32 %v210_v17, 0.0  ;;  %v1297_v60 = vld [vmem:[%s1779_s7 + $0x50] ss:$12 sps:$4 sm:$0xff]  }
 0x223   :  { %1318 = vrsqrt.f32 %v215_v18  ;;  %v216_v20 = vadd.f32 1e-05, %v212_v19  ;;  %569 = vmatpush1.bf16.msra.mxu0 %v1262_v63  ;;  %v1301_v63 = vld [vmem:[%s1779_s7 + $0x68] ss:$12 sps:$4 sm:$0xff]  }
 0x224   :  { %570 = vmatprep.subr.bf16.mxu0 %v1268_v2  ;;  %v1305_v2 = vld [vmem:[%s1779_s7 + $0x80] ss:$12 sps:$4 sm:$0xff]  }
 0x225   :  { %1320 = vrsqrt.f32 %v216_v20 }
 0x227   :  { %571 = vmatpush1.bf16.msra.mxu0 %v1266_v1  ;;  %v1302_v1 = vld [vmem:[%s1779_s7 + $0x78] ss:$12 sps:$4 sm:$0xff]  }
 0x228   :  { %572 = vmatprep.subr.bf16.mxu0 %v1272_v4  ;;  %v1306_v4 = vld [vmem:[%s1779_s7 + $0x90] ss:$12 sps:$4 sm:$0xff]  }
 0x22b   :  { %573 = vmatpush1.bf16.msra.mxu0 %v1270_v6  ;;  %v1309_v6 = vld [vmem:[%s1779_s7 + $0x98] ss:$12 sps:$4 sm:$0xff]  }
 0x22c   :  { %574 = vmatprep.subr.bf16.mxu0 %v1276_v8 }
 0x22d   :  { %v1319_v23 = vpop.eup %1318 }
 0x22e   :  { %v219_v25 = vmul.f32 %v1319_v23, %v213_v21 }
 0x22f   :  { %v1321_v26 = vpop.eup %1320  ;;  %575 = vmatpush1.bf16.msra.mxu0 %v1274_v9  ;;  %v386_v9 = vld [vmem:[%s1780_s1 + $0x8] sm:$0xff] }
 0x230   :  { %v220_v27 = vmul.f32 %v1321_v26, %v214_v24  ;;  %v225_v28 = vmul.f32 %v224_v22, %v219_v25  ;;  %576 = vmatprep.subr.bf16.mxu0 %v1280_v11  ;;  %v1312_v11 = vld [vmem:[%s1779_s7 + $0xac] ss:$12 sps:$4 sm:$0xff]  }
 0x232   :  { %v226_v32 = vmul.f32 %v224_v22, %v220_v27  ;;  %v231_v33 = vadd.f32 %v230_v29, %v225_v28 }
 0x233   :  { %577 = vmatpush1.bf16.msra.mxu0 %v1278_v12 }
 0x234   :  { %v232_v34 = vadd.f32 %v230_v29, %v226_v32  ;;  %807 = vmatprep.subr.bf16.mxu0 %v1284_v14  ;;  %v1310_v14 = vld [vmem:[%s1779_s7 + $0xa8] ss:$12 sps:$4 sm:$0xff]  }
 0x236   :  { %v233_v35 = vpack.c.bf16 %v232_v34, %v231_v33  ;;  %v375_v33 = vsub.s32 2, %v1466_v30 }
 0x238   :  { %1182 = vmatmul.mubr.bf16.vlgmr.msra.gmra.mrb[0].mxu1 %v233_v35  ;;  %v376_v35 = vrot.slane %v1485_v48, %v375_v33 }
 0x239   :  { %1201 = vmatprep.mubr.msk.bf16.mxu1 %vm1351_vm0, %v1350_v5  ;;  %1186 = vmatpush3.bf16.msra.mxu1 %v1253_v53  ;;  %v1288_v53 = vld [vmem:[%s1779_s7 + $0x1c] ss:$12 sps:$4 sm:$0xff]  }
 0x23a   :  { %1187 = vmatprep.subr.bf16.mxu1 %v1350_v5 }
 0x23d   :  { %1188 = vmatpush3.bf16.msra.mxu1 %v1257_v56  ;;  %v1292_v56 = vld [vmem:[%s1779_s7 + $0x34] ss:$12 sps:$4 sm:$0xff]  }
 0x23e   :  { %1189 = vmatprep.subr.bf16.mxu1 %v1350_v5 }
 0x241   :  { %1190 = vmatpush3.bf16.msra.mxu1 %v1261_v61  ;;  %v1300_v61 = vld [vmem:[%s1779_s7 + $0x64] ss:$12 sps:$4 sm:$0xff]  }
 0x242   :  { %1191 = vmatprep.subr.bf16.mxu1 %v1350_v5 }
 0x245   :  { %1192 = vmatpush3.bf16.msra.mxu1 %v1265_v0  ;;  %v1304_v0 = vld [vmem:[%s1779_s7 + $0x7c] ss:$12 sps:$4 sm:$0xff]  }
 0x246   :  { %1193 = vmatprep.subr.bf16.mxu1 %v1350_v5 }
 0x249   :  { %1194 = vmatpush3.bf16.msra.mxu1 %v1269_v3  ;;  %v1308_v3 = vld [vmem:[%s1779_s7 + $0x94] ss:$12 sps:$4 sm:$0xff]  }
 0x24a   :  { %1195 = vmatprep.subr.bf16.mxu1 %v1350_v5 }
 0x24d   :  { %1196 = vmatpush3.bf16.msra.mxu1 %v1273_v7  ;;  %v385_v7 = vld [vmem:[%s1780_s1] sm:$0xff] }
 0x24e   :  { %1197 = vmatprep.subr.bf16.mxu1 %v1350_v5 }
 0x251   :  { %1198 = vmatpush3.bf16.msra.mxu1 %v1277_v10 }
 0x252   :  { %1199 = vmatprep.subr.bf16.mxu1 %v1350_v5 }
 0x255   :  { %1200 = vmatpush3.bf16.msra.mxu1 %v1281_v13 }
 0x256   :  { %1205 = vmatprep.subr.bf16.mxu1 %v1350_v5 }
 0x30b   :  { %v336_v40 = vpop.f32.mrb[0].mxu1 }
 0x30c   :  { %v337_v41 = vadd.f32 %v336_v40, %v253_v39  ;;  %v1183_v42 = vpop.f32.mrb[1].mxu1 }
 0x30d   :  { %v339_v43 = vpop.f32.mrb[2].mxu1 }
 0x30e   :  { %v1531_v44 = vmax.f32 %v337_v41, 0.0  ;;  %v340_v45 = vadd.f32 %v339_v43, %v253_v39  ;;  %v1184_v46 = vpop.f32.mrb[3].mxu1 }
 0x30f   :  { %v382_v46 = vrot.slane %v1485_v48, %v381_v38 }
 0x310   :  { %v1533_v47 = vmax.f32 %v340_v45, 0.0  ;;  %345 = vadd.xlane.f32.xlu0 %v1531_v44  ;;  %v349_v49 = vmul.f32 %v1531_v44, %v1531_v44 }
 0x312   :  { %347 = vadd.xlane.f32.xlu1 %v1533_v47  ;;  %v350_v50 = vmul.f32 %v1533_v47, %v1533_v47 }
 0x314   :  { %351 = vadd.xlane.f32.xlu0 %v349_v49 }
 0x316   :  { %353 = vadd.xlane.f32.xlu1 %v350_v50 }
 0x327   :  { %396 = vperm.xlu1 %1233, %v388_v57   ;;  %v1290_v57 = vld [vmem:[%s1779_s7 + $0x30] ss:$12 sps:$4 sm:$0xff]  }
 0x32a   :  { %391 = vperm.xlu0 %1232, %v387_v59   ;;  %v1294_v59 = vld [vmem:[%s1779_s7 + $0x48] ss:$12 sps:$4 sm:$0xff]  }
 0x39d   :  { %v346_v15 = vpop.xlane.xlu0 %345 }
 0x39e   :  { %v355_v16 = vmul.f32 0.015625, %v346_v15  ;;  %v1313_v15 = vld [vmem:[%s1779_s7 + $0xb0] ss:$12 sps:$4 sm:$0xff]  }
 0x39f   :  { %v348_v17 = vpop.xlane.xlu1 %347 }
 0x3a0   :  { %v356_v18 = vmul.f32 0.015625, %v348_v17  ;;  %v359_v20 = vmul.f32 %v355_v16, %v355_v16  ;;  %v365_v34 = vsub.f32 %v1531_v44, %v355_v16 }
 0x3a1   :  { %v352_v19 = vpop.xlane.xlu0 %351 }
 0x3a2   :  { %v357_v21 = vmul.f32 0.015625, %v352_v19  ;;  %v360_v23 = vmul.f32 %v356_v18, %v356_v18  ;;  %v366_v40 = vsub.f32 %v1533_v47, %v356_v18 }
 0x3a3   :  { %v354_v22 = vpop.xlane.xlu1 %353 }
 0x3a4   :  { %v361_v24 = vsub.f32 %v357_v21, %v359_v20  ;;  %v358_v25 = vmul.f32 0.015625, %v354_v22  ;;  %v1734_v21 = vld [vmem:[%s1775_s8 + $0x8] sm:$0xff] }
 0x3a5   :  { %v896_v22 = vrot.slane %v1734_v21, %v1469_v31 }
 0x3a6   :  { %v363_v26 = vmax.f32 %v361_v24, 0.0  ;;  %v362_v27 = vsub.f32 %v358_v25, %v360_v23  ;;  %v916_v24 = vrot.slane %v1734_v21, %v1477_v37 }
 0x3a7   :  { %v397_v10 = vpop.permute.xlu1 %396 }
 0x3a8   :  { %v367_v28 = vadd.f32 1e-05, %v363_v26  ;;  %v364_v29 = vmax.f32 %v362_v27, 0.0  ;;  %v1720_v13 = vmul.f32 %v397_v10, %v386_v9 }
 0x3a9   :  { %v392_v8 = vpop.permute.xlu0 %391 }
 0x3aa   :  { %1322 = vrsqrt.f32 %v367_v28  ;;  %v368_v32 = vadd.f32 1e-05, %v364_v29  ;;  %v1718_v12 = vmul.f32 %v392_v8, %v385_v7 }
 0x3ac   :  { %1324 = vrsqrt.f32 %v368_v32  ;;  %v646_v16 = vpack.c.bf16 %v1720_v13, %v1718_v12 }
 0x3b4   :  { %v1323_v39 = vpop.eup %1322 }
 0x3b5   :  { %v371_v41 = vmul.f32 %v1323_v39, %v365_v34 }
 0x3b6   :  { %v1325_v42 = vpop.eup %1324 }
 0x3b7   :  { %v372_v43 = vmul.f32 %v1325_v42, %v366_v40  ;;  %v377_v45 = vmul.f32 %v376_v35, %v371_v41 }
 0x3b9   :  { %v378_v49 = vmul.f32 %v376_v35, %v372_v43  ;;  %v383_v50 = vadd.f32 %v382_v46, %v377_v45 }
 0x3bb   :  { %v384_v44 = vadd.f32 %v382_v46, %v378_v49 }
 0x3bd   :  { %v401_v47 = vpack.c.bf16 %v384_v44, %v383_v50  ;;  %v940_v44 = vrot.slane %v1734_v21, %v381_v38 }
 0x3bf   :  { %595 = vmatmul.mubr.bf16.vlgmr.msra.gmra.mrb[4].mxu0 %v401_v47  ;;  %1202 = vmatmul.mubr.bf16.vlgmr.msra.gmra.mrb[4].mxu1 %v401_v47 }
 0x3c0   :  { %808 = vmatpush1.bf16.msra.mxu0 %v1282_v51  ;;  %1206 = vmatpush3.bf16.msra.mxu1 %v1285_v52  ;;  %v934_v52 = vrot.slane %v1734_v21, %v375_v33 }
 0x3c1   :  { %809 = vmatprep.subr.bf16.mxu0 %v1288_v53  ;;  %1207 = vmatprep.subr.bf16.mxu1 %v1350_v5 }
 0x3c2   :  { %839 = vmatprep.mubr.bf16.mxu0 %v1352_v36  ;;  %1221 = vmatprep.mubr.msk.bf16.mxu1 %vm1351_vm0, %v1350_v5  ;;  %v1296_v36 = vld [vmem:[%s1779_s7 + $0x4c] ss:$12 sps:$4 sm:$0xff]  }
 0x3c4   :  { %810 = vmatpush1.bf16.msra.mxu0 %v1286_v54  ;;  %1208 = vmatpush3.bf16.msra.mxu1 %v1289_v55 }
 0x3c5   :  { %811 = vmatprep.subr.bf16.mxu0 %v1292_v56  ;;  %1209 = vmatprep.subr.bf16.mxu1 %v1350_v5 }
 0x3c8   :  { %812 = vmatpush1.bf16.msra.mxu0 %v1290_v57  ;;  %1210 = vmatpush3.bf16.msra.mxu1 %v1293_v58 }
 0x3c9   :  { %813 = vmatprep.subr.bf16.mxu0 %v1296_v36  ;;  %1211 = vmatprep.subr.bf16.mxu1 %v1350_v5 }
 0x3cc   :  { %814 = vmatpush1.bf16.msra.mxu0 %v1294_v59  ;;  %1212 = vmatpush3.bf16.msra.mxu1 %v1297_v60 }
 0x3cd   :  { %815 = vmatprep.subr.bf16.mxu0 %v1300_v61  ;;  %1213 = vmatprep.subr.bf16.mxu1 %v1350_v5 }
 0x3d0   :  { %816 = vmatpush1.bf16.msra.mxu0 %v1298_v62  ;;  %1214 = vmatpush3.bf16.msra.mxu1 %v1301_v63 }
 0x3d1   :  { %817 = vmatprep.subr.bf16.mxu0 %v1304_v0  ;;  %1215 = vmatprep.subr.bf16.mxu1 %v1350_v5 }
 0x3d4   :  { %818 = vmatpush1.bf16.msra.mxu0 %v1302_v1  ;;  %1216 = vmatpush3.bf16.msra.mxu1 %v1305_v2 }
 0x3d5   :  { %819 = vmatprep.subr.bf16.mxu0 %v1308_v3  ;;  %1217 = vmatprep.subr.bf16.mxu1 %v1350_v5 }
 0x3d8   :  { %820 = vmatpush1.bf16.msra.mxu0 %v1306_v4  ;;  %1218 = vmatpush3.bf16.msra.mxu1 %v1309_v6 }
 0x3d9   :  { %821 = vmatprep.subr.bf16.mxu0 %v1312_v11  ;;  %1219 = vmatprep.subr.bf16.mxu1 %v1350_v5 }
 0x3dc   :  { %822 = vmatpush1.bf16.msra.mxu0 %v1310_v14  ;;  %1220 = vmatpush3.bf16.msra.mxu1 %v1313_v15 }
 0x3df   :  { %840 = vmatmul.mubr.bf16.vlgmr.msra.gmra.mrb[4].mxu0 %v646_v16  ;;  %1222 = vmatmul.mubr.bf16.vlgmr.msra.gmra.mrb[8].mxu1 %v646_v16 }
 0x492   :  { %v639_v17 = vpop.f32.mrb[4].mxu1 }
 0x493   :  { %v1203_v18 = vpop.f32.mrb[5].mxu1  ;;  %v935_v56 = vadd.f32 %v934_v52, %v639_v17 }
 0x494   :  { %v642_v19 = vpop.f32.mrb[6].mxu1 }
 0x495   :  { %v1204_v20 = vpop.f32.mrb[7].mxu1  ;;  %v936_v59 = vadd.f32 %v934_v52, %v642_v19 }
 0x4b2   :  { %v841_v5 = vpop.f32.mrb[4].mxu0  ;;  %v884_v23 = vpop.f32.mrb[8].mxu1 }
 0x4b3   :  { %v897_v25 = vadd.f32 %v896_v22, %v841_v5  ;;  %v843_v26 = vpop.f32.mrb[5].mxu0  ;;  %v1223_v27 = vpop.f32.mrb[9].mxu1  ;;  %v941_v53 = vadd.f32 %v940_v44, %v884_v23 }
 0x4b4   :  { %v845_v28 = vpop.f32.mrb[6].mxu0  ;;  %v887_v29 = vpop.f32.mrb[10].mxu1  ;;  %v917_v40 = vadd.f32 %v916_v24, %v843_v26 }
 0x4b5   :  { %v1105_v32 = vmul.f32 -1.442695, %v897_v25  ;;  %v898_v34 = vadd.f32 %v896_v22, %v845_v28  ;;  %v847_v35 = vpop.f32.mrb[7].mxu0  ;;  %v1224_v39 = vpop.f32.mrb[11].mxu1  ;;  %v942_v58 = vadd.f32 %v940_v44, %v887_v29  ;;  %v989_v28 = vsub.s32 4, %v1466_v30 }
 0x4b6   :  { %v918_v42 = vadd.f32 %v916_v24, %v847_v35  ;;  %v1107_v31 = vmul.f32 -1.442695, %v917_v40  ;;  %v995_v29 = vsub.s32 5, %v1466_v30 }
 0x4b7   :  { %1326 = vpow2.f32 %v1105_v32  ;;  %v1106_v41 = vmul.f32 -1.442695, %v898_v34  ;;  %v990_v34 = vrot.slane %v1485_v48, %v989_v28 }
 0x4b8   :  { %v1108_v43 = vmul.f32 -1.442695, %v918_v42  ;;  %v996_v40 = vrot.slane %v1485_v48, %v995_v29  ;;  %v1014_v48 = vrot.slane %v1734_v21, %v995_v29 }
 0x4b9   :  { %1328 = vpow2.f32 %v1106_v41 }
 0x4ba   :  { %1330 = vpow2.f32 %v1107_v31  ;;  %v1004_v31 = vrot.slane %v1734_v21, %v989_v28 }
 0x4bb   :  { %1332 = vpow2.f32 %v1108_v43 }
 0x4c1   :  { %v1327_v45 = vpop.eup %1326 }
 0x4c2   :  { %v905_v37 = vadd.f32 1.0, %v1327_v45 }
 0x4c3   :  { %v1329_v46 = vpop.eup %1328 }
 0x4c4   :  { %1334 = vrcp.f32 %v905_v37  ;;  %v906_v49 = vadd.f32 1.0, %v1329_v46  ;;  %v1331_v50 = vpop.eup %1330 }
 0x4c5   :  { %v1333_v51 = vpop.eup %1332  ;;  %v925_v47 = vadd.f32 1.0, %v1331_v50 }
 0x4c6   :  { %1336 = vrcp.f32 %v906_v49  ;;  %v926_v54 = vadd.f32 1.0, %v1333_v51 }
 0x4c7   :  { %1338 = vrcp.f32 %v925_v47 }
 0x4c8   :  { %1340 = vrcp.f32 %v926_v54 }
 0x4ce   :  { %v1335_v55 = vpop.eup %1334 }
 0x4cf   :  { %v943_v57 = vmul.f32 %v1335_v55, %v941_v53 }
 0x4d0   :  { %v1337_v36 = vpop.eup %1336 }
 0x4d1   :  { %v945_v60 = vadd.f32 %v943_v57, %v935_v56  ;;  %v944_v61 = vmul.f32 %v1337_v36, %v942_v58  ;;  %v1339_v62 = vpop.eup %1338 }
 0x4d2   :  { %v1341_v63 = vpop.eup %1340  ;;  %v949_v0 = vsub.f32 1.0, %v1339_v62  ;;  %v953_v2 = vmul.f32 %v1339_v62, %v1718_v12 }
 0x4d3   :  { %1342 = vtanh.f32 %v945_v60  ;;  %v946_v38 = vadd.f32 %v944_v61, %v936_v59  ;;  %v950_v3 = vsub.f32 1.0, %v1341_v63  ;;  %v954_v8 = vmul.f32 %v1341_v63, %v1720_v13 }
 0x4d5   :  { %1344 = vtanh.f32 %v946_v38 }
 0x4dd   :  { %v1343_v33 = vpop.eup %1342 }
 0x4de   :  { %v951_v1 = vmul.f32 %v1343_v33, %v949_v0 }
 0x4df   :  { %v1345_v4 = vpop.eup %1344 }
 0x4e0   :  { %v955_v6 = vadd.f32 %v953_v2, %v951_v1  ;;  %v952_v7 = vmul.f32 %v1345_v4, %v950_v3 }
 0x4e2   :  { %959 = vadd.xlane.f32.xlu1 %v955_v6  ;;  %957 = vst [vmem:[%s1781_s10] sm:$0xff] %v955_v6  ;;  %v956_v9 = vadd.f32 %v954_v8, %v952_v7  ;;  %v963_v10 = vmul.f32 %v955_v6, %v955_v6 }
 0x4e4   :  { %961 = vadd.xlane.f32.xlu0 %v956_v9  ;;  %958 = vst [vmem:[%s1781_s10 + $0x8] sm:$0xff] %v956_v9  ;;  %v964_v11 = vmul.f32 %v956_v9, %v956_v9 }
 0x4e6   :  { %965 = vadd.xlane.f32.xlu1 %v963_v10 }
 0x4ea   :  { %967 = vadd.xlane.f32.xlu1 %v964_v11 }
 0x56f   :  { %v960_v12 = vpop.xlane.xlu1 %959 }
 0x570   :  { %v969_v14 = vmul.f32 0.015625, %v960_v12 }
 0x571   :  { %v962_v15 = vpop.xlane.xlu0 %961 }
 0x572   :  { %v973_v13 = vmul.f32 %v969_v14, %v969_v14  ;;  %v970_v17 = vmul.f32 0.015625, %v962_v15  ;;  %v979_v32 = vsub.f32 %v955_v6, %v969_v14 }
 0x573   :  { %v966_v16 = vpop.xlane.xlu1 %965 }
 0x574   :  { %v971_v18 = vmul.f32 0.015625, %v966_v16  ;;  %v974_v22 = vmul.f32 %v970_v17, %v970_v17  ;;  %v980_v41 = vsub.f32 %v956_v9, %v970_v17 }
 0x576   :  { %v975_v19 = vsub.f32 %v971_v18, %v973_v13 }
 0x577   :  { %v968_v20 = vpop.xlane.xlu1 %967 }
 0x578   :  { %v977_v5 = vmax.f32 %v975_v19, 0.0  ;;  %v972_v23 = vmul.f32 0.015625, %v968_v20 }
 0x57a   :  { %v981_v24 = vadd.f32 1e-05, %v977_v5  ;;  %v976_v25 = vsub.f32 %v972_v23, %v974_v22 }
 0x57c   :  { %1346 = vrsqrt.f32 %v981_v24  ;;  %v978_v26 = vmax.f32 %v976_v25, 0.0 }
 0x57e   :  { %v982_v27 = vadd.f32 1e-05, %v978_v26 }
 0x580   :  { %1348 = vrsqrt.f32 %v982_v27 }
 0x586   :  { %v1347_v35 = vpop.eup %1346 }
 0x587   :  { %v985_v39 = vmul.f32 %v1347_v35, %v979_v32 }
 0x589   :  { %v991_v42 = vmul.f32 %v990_v34, %v985_v39 }
 0x58a   :  { %v1349_v43 = vpop.eup %1348 }
 0x58b   :  { %v997_v45 = vadd.f32 %v996_v40, %v991_v42  ;;  %v986_v37 = vmul.f32 %v1349_v43, %v980_v41 }
 0x58d   :  { %999 = vst [vmem:[%s1782_s11] sm:$0xff] %v997_v45  ;;  %v1005_v46 = vmul.f32 %v1004_v31, %v997_v45  ;;  %v992_v30 = vmul.f32 %v990_v34, %v986_v37 }
 0x58f   :  { %1007 = vadd.xlane.f32.xlu1 %v1005_v46  ;;  %v998_v49 = vadd.f32 %v996_v40, %v992_v30 }
 0x591   :  { %v1006_v50 = vmul.f32 %v1004_v31, %v998_v49  ;;  %1000 = vst [vmem:[%s1782_s11 + $0x8] sm:$0xff] %v998_v49 }
 0x593   :  { %1009 = vadd.xlane.f32.xlu1 %v1006_v50 }
 0x61c   :  { %v1008_v44 = vpop.xlane.xlu1 %1007 }
 0x61d   :  { %v1015_v51 = vadd.f32 %v1014_v48, %v1008_v44 }
 0x61f   :  { %1019 = vperm.xlu1 %1233, %v1015_v51  }
 0x620   :  { %v1010_v52 = vpop.xlane.xlu1 %1009 }
 0x621   :  { %v1016_v47 = vadd.f32 %v1014_v48, %v1010_v52 }
 0x623   :  { %1024 = vperm.xlu0 %1232, %v1016_v47  }
 0x69e   :  { %v1020_v53 = vpop.permute.xlu1 %1019 }
 0x69f   :  { %1027 = vst [vmem:[%s1783_s9] sm:$0xff] %v1020_v53 }
 0x6a2   :  { %v1025_v54 = vpop.permute.xlu0 %1024 }
 0x6a3   :  { %1028 = vst [vmem:[%s1783_s9 + $0x8] sm:$0xff] %v1025_v54 }

</bundles_post_ra>
